<compile_context>
chip_gen: v7x
topology: tpu7x:2x2x1
jax: 0.10.0
libtpu: 0.0.40
codegen_flags: <defaults>
</compile_context>

<pallas_src>
import jax
import jax.numpy as jnp
from jax import lax
from jax.experimental import pallas as pl
from jax.experimental.pallas import tpu as pltpu

LANE = 128


def _round_up(x, m):
    return (x + m - 1) // m * m


def _make_conv3x3_kernel(tile_h, w_out, w_pad):
    """3x3 conv over a row-major (rows, C) slab; channels live on the lane axis."""
    n_valid = tile_h * w_pad  # accumulator rows (output rows incl. W padding)

    def conv3x3_kernel(x_ref, w_ref, b_ref, o_ref, acc_ref):
        # x_ref  : (1, band_rows, ci_blk)   band of (tile_h+3) padded image rows, flattened
        # w_ref  : (9, ci_blk, co_blk)
        # b_ref  : (1, co_blk)              f32
        # o_ref  : (1, tile_h, w_out, co_blk)
        # acc_ref: (tile_h*w_pad, co_blk)   f32 VMEM scratch accumulator
        ci = pl.program_id(2)

        @pl.when(ci == 0)
        def _init():
            acc_ref[...] = jnp.zeros_like(acc_ref)

        # 9 taps = 9 statically shifted views of the row-major slab, each a big-K MXU matmul.
        for kh in range(3):
            for kw in range(3):
                shift = kh * w_pad + kw                      # static sublane offset
                patch = x_ref[0, pl.ds(shift, n_valid), :]   # (n_valid, ci_blk), no relayout
                wk = w_ref[kh * 3 + kw]                      # (ci_blk, co_blk)
                acc_ref[...] += jnp.dot(patch, wk,
                                        preferred_element_type=jnp.float32)

        @pl.when(ci == pl.num_programs(2) - 1)
        def _finalize():
            res = acc_ref[...] + b_ref[...]                  # bias once, in f32
            res = res.reshape(tile_h, w_pad, -1)[:, :w_out, :]
            o_ref[0] = res.astype(o_ref.dtype)

    return conv3x3_kernel


def conv3x3_pallas(x_nchw, weight, bias, *, tile_h=8, compute_dtype=None):
    """3x3 conv, stride 1, padding 1.  x: (B,Cin,H,W); weight: (Cout,Cin,3,3); bias: (Cout,)."""
    B, Cin, H, W = x_nchw.shape
    Cout = weight.shape[0]
    out_dtype = x_nchw.dtype
    compute_dtype = out_dtype if compute_dtype is None else compute_dtype

    # Channel tiles (lane-dense: multiples of 128).
    cin_p = _round_up(Cin, LANE)
    cout_p = _round_up(Cout, LANE)
    ci_blk = 256 if cin_p % 256 == 0 else LANE        # larger K tile when Cin allows (v6e/v7x)
    co_blk = LANE
    n_ci = cin_p // ci_blk
    n_co = cout_p // co_blk

    # Spatial tiles along H (1-row halo each side); W padded to a sublane multiple so every
    # per-row block starts 8-aligned and the kw shifts are cheap.
    tile_h = max(1, min(tile_h, H))
    n_h = pl.cdiv(H, tile_h)
    h_r = n_h * tile_h
    w_pad = _round_up(W + 2, 8)
    band_rows = (tile_h + 3) * w_pad                  # one spare zero row keeps shifted views in-bounds

    # ---- wrapper glue: NCHW -> lane-dense, row-major NHWC bands ----------------------------
    # TODO(synk): keep activations NHWC end-to-end in the surrounding model to drop the
    # transpose/pad HBM passes around this call.
    x_nhwc = jnp.transpose(x_nchw, (0, 2, 3, 1))
    x_p = jnp.pad(
        x_nhwc,
        ((0, 0), (1, h_r - H + 2), (1, w_pad - W - 1), (0, cin_p - Cin)),
    ).astype(compute_dtype)                           # (B, h_r+3, w_pad, cin_p)
    band_idx = (jnp.arange(n_h) * tile_h)[:, None] + jnp.arange(tile_h + 3)[None, :]
    x_bands = x_p[:, band_idx].reshape(B * n_h, band_rows, cin_p)

    w_hwio = jnp.transpose(weight, (2, 3, 1, 0))      # (3,3,Cin,Cout)
    w_p = jnp.pad(w_hwio, ((0, 0), (0, 0), (0, cin_p - Cin), (0, cout_p - Cout)))
    w_flat = w_p.reshape(9, cin_p, cout_p).astype(compute_dtype)
    b_p = jnp.pad(bias, (0, cout_p - Cout)).reshape(1, cout_p).astype(jnp.float32)

    kernel = _make_conv3x3_kernel(tile_h, W, w_pad)

    cost = pl.CostEstimate(
        flops=2 * B * H * W * Cin * Cout * 9,
        transcendentals=0,
        bytes_accessed=(x_bands.size * x_bands.dtype.itemsize
                        + w_flat.size * w_flat.dtype.itemsize
                        + B * h_r * W * cout_p * x_nchw.dtype.itemsize),
    )

    out_bands = pl.pallas_call(
        kernel,
        out_shape=jax.ShapeDtypeStruct((B * n_h, tile_h, W, cout_p), out_dtype),
        grid_spec=pltpu.PrefetchScalarGridSpec(
            num_scalar_prefetch=0,
            grid=(B * n_h, n_co, n_ci),               # Cin reduction axis last
            in_specs=[
                pl.BlockSpec((1, band_rows, ci_blk), lambda g, co, ci: (g, 0, ci)),
                pl.BlockSpec((9, ci_blk, co_blk), lambda g, co, ci: (0, ci, co)),
                pl.BlockSpec((1, co_blk), lambda g, co, ci: (0, co)),
            ],
            out_specs=pl.BlockSpec((1, tile_h, W, co_blk),
                                   lambda g, co, ci: (g, 0, 0, co)),
            scratch_shapes=[pltpu.VMEM((tile_h * w_pad, co_blk), jnp.float32)],
        ),
        compiler_params=pltpu.CompilerParams(
            dimension_semantics=("parallel", "parallel", "arbitrary"),
            vmem_limit_bytes=32 * 1024 * 1024,
        ),
        cost_estimate=cost,
    )(x_bands, w_flat, b_p)

    out = out_bands.reshape(B, h_r, W, cout_p)[:, :H, :, :Cout]
    return jnp.transpose(out, (0, 3, 1, 2))           # back to NCHW


class IgnoreArgs:
    """JAX port of torchsupport IgnoreArgs: forwards x to self.net, drops *args/**kwargs."""

    def __init__(self, net):
        self.net = net

    def __call__(self, x, *args, **kwargs):
        return self.net(x)


if __name__ == "__main__":
    key = jax.random.PRNGKey(0)
    kx, kw, kb = jax.random.split(key, 3)

    B, Cin, Cout, H, W = 2, 4, 4, 16, 16
    x = jax.random.normal(kx, (B, Cin, H, W), dtype=jnp.float32)
    weight = jax.random.normal(kw, (Cout, Cin, 3, 3), dtype=jnp.float32) * 0.1
    bias = jax.random.normal(kb, (Cout,), dtype=jnp.float32) * 0.1

    # reference with XLA conv (true f32)
    ref = lax.conv_general_dilated(
        x, weight, window_strides=(1, 1), padding=((1, 1), (1, 1)),
        dimension_numbers=("NCHW", "OIHW", "NCHW"),
        precision=lax.Precision.HIGHEST) + bias[None, :, None, None]

    # f32 path (matches the PyTorch Conv2d semantics); extra args/kwargs are ignored.
    module = IgnoreArgs(lambda inp: conv3x3_pallas(inp, weight, bias, tile_h=8))
    out = module(x, "ignored_positional", some_kwarg=123)
    out = jax.block_until_ready(out)
    assert out.shape == (B, Cout, H, W)
    assert jnp.allclose(out, ref, atol=1e-4, rtol=1e-4)

    # bf16-MXU perf path (v6e/v7x feedback), f32 accumulation -> looser tolerance.
    module_bf16 = IgnoreArgs(
        lambda inp: conv3x3_pallas(inp, weight, bias, tile_h=8,
                                   compute_dtype=jnp.bfloat16))
    out_bf16 = jax.block_until_ready(module_bf16(x, 1, 2, foo="bar"))
    assert jnp.allclose(out_bf16, ref, atol=5e-2, rtol=5e-2)

    print("KERNEL_OK")
</pallas_src>

<mosaic_0001>
module attributes {stable_mosaic.version = 11 : i64} {
  func.func @conv3x3_kernel(%arg0: i32, %arg1: i32, %arg2: i32, %arg3: memref<1x264x128xf32, #tpu.memory_space<vmem>>, %arg4: memref<9x128x128xf32, #tpu.memory_space<vmem>>, %arg5: memref<1x128xf32, #tpu.memory_space<vmem>>, %arg6: memref<1x8x16x128xf32, #tpu.memory_space<vmem>>, %arg7: memref<192x128xf32, #tpu.memory_space<vmem>>) attributes {dimension_semantics = [#tpu.dimension_semantics<parallel>, #tpu.dimension_semantics<parallel>, #tpu.dimension_semantics<arbitrary>], iteration_bounds = array<i64: 4, 1, 1>, scalar_prefetch = 0 : i64, scratch_operands = 1 : i64, tpu.core_type = #tpu.core_type<tc>, window_params = [{transform_indices = @transform_0, window_bounds = array<i64: 1, 264, 128>}, {transform_indices = @transform_1, window_bounds = array<i64: 9, 128, 128>}, {transform_indices = @transform_2, window_bounds = array<i64: 1, 128>}, {transform_indices = @transform_3, window_bounds = array<i64: 1, 8, 16, 128>}]} {
    %c0_i32 = arith.constant 0 : i32
    %0 = arith.cmpi eq, %arg2, %c0_i32 : i32
    %1 = arith.extui %0 : i1 to i32
    %c0_i32_0 = arith.constant 0 : i32
    %2 = arith.cmpi ne, %1, %c0_i32_0 : i32
    scf.if %2 {
      %cst_86 = arith.constant 0.000000e+00 : f32
      %78 = vector.broadcast %cst_86 : f32 to vector<192x128xf32>
      %c0_87 = arith.constant 0 : index
      %c0_88 = arith.constant 0 : index
      %79 = vector.load %arg7[%c0_87, %c0_88] : memref<192x128xf32, #tpu.memory_space<vmem>>, vector<192x128xf32>
      tpu.vector_store %arg7[%c0_87, %c0_88], %78 {strides = array<i32>} : memref<192x128xf32, #tpu.memory_space<vmem>>, vector<192x128xf32>,
    } else {
    }
    %c0 = arith.constant 0 : index
    %c0_1 = arith.constant 0 : index
    %c0_2 = arith.constant 0 : index
    %3 = vector.load %arg3[%c0, %c0_1, %c0_2] : memref<1x264x128xf32, #tpu.memory_space<vmem>>, vector<1x192x128xf32>
    %4 = vector.shape_cast %3 : vector<1x192x128xf32> to vector<192x128xf32>
    %c0_3 = arith.constant 0 : index
    %c0_4 = arith.constant 0 : index
    %c0_5 = arith.constant 0 : index
    %5 = vector.load %arg4[%c0_3, %c0_4, %c0_5] : memref<9x128x128xf32, #tpu.memory_space<vmem>>, vector<1x128x128xf32>
    %6 = vector.shape_cast %5 : vector<1x128x128xf32> to vector<128x128xf32>
    %c0_6 = arith.constant 0 : index
    %c0_7 = arith.constant 0 : index
    %7 = vector.load %arg7[%c0_6, %c0_7] : memref<192x128xf32, #tpu.memory_space<vmem>>, vector<192x128xf32>
    %cst = arith.constant dense<0.000000e+00> : vector<192x128xf32>
    %8 = tpu.matmul %4, %6, %cst {dimension_numbers = #tpu.dot_dimension_numbers<[1], [0], [0], [1], [0, 0, 1, 1], [], []>} : vector<192x128xf32>, vector<128x128xf32>, vector<192x128xf32> -> vector<192x128xf32>
    %9 = arith.addf %7, %8 : vector<192x128xf32>
    %c0_8 = arith.constant 0 : index
    %c0_9 = arith.constant 0 : index
    %10 = vector.load %arg7[%c0_8, %c0_9] : memref<192x128xf32, #tpu.memory_space<vmem>>, vector<192x128xf32>
    tpu.vector_store %arg7[%c0_8, %c0_9], %9 {strides = array<i32>} : memref<192x128xf32, #tpu.memory_space<vmem>>, vector<192x128xf32>,
    %c0_10 = arith.constant 0 : index
    %c1 = arith.constant 1 : index
    %c0_11 = arith.constant 0 : index
    %11 = vector.load %arg3[%c0_10, %c1, %c0_11] : memref<1x264x128xf32, #tpu.memory_space<vmem>>, vector<1x192x128xf32>
    %12 = vector.shape_cast %11 : vector<1x192x128xf32> to vector<192x128xf32>
    %c1_12 = arith.constant 1 : index
    %c0_13 = arith.constant 0 : index
    %c0_14 = arith.constant 0 : index
    %13 = vector.load %arg4[%c1_12, %c0_13, %c0_14] : memref<9x128x128xf32, #tpu.memory_space<vmem>>, vector<1x128x128xf32>
    %14 = vector.shape_cast %13 : vector<1x128x128xf32> to vector<128x128xf32>
    %c0_15 = arith.constant 0 : index
    %c0_16 = arith.constant 0 : index
    %15 = vector.load %arg7[%c0_15, %c0_16] : memref<192x128xf32, #tpu.memory_space<vmem>>, vector<192x128xf32>
    %cst_17 = arith.constant dense<0.000000e+00> : vector<192x128xf32>
    %16 = tpu.matmul %12, %14, %cst_17 {dimension_numbers = #tpu.dot_dimension_numbers<[1], [0], [0], [1], [0, 0, 1, 1], [], []>} : vector<192x128xf32>, vector<128x128xf32>, vector<192x128xf32> -> vector<192x128xf32>
    %17 = arith.addf %15, %16 : vector<192x128xf32>
    %c0_18 = arith.constant 0 : index
    %c0_19 = arith.constant 0 : index
    %18 = vector.load %arg7[%c0_18, %c0_19] : memref<192x128xf32, #tpu.memory_space<vmem>>, vector<192x128xf32>
    tpu.vector_store %arg7[%c0_18, %c0_19], %17 {strides = array<i32>} : memref<192x128xf32, #tpu.memory_space<vmem>>, vector<192x128xf32>,
    %c0_20 = arith.constant 0 : index
    %c2 = arith.constant 2 : index
    %c0_21 = arith.constant 0 : index
    %19 = vector.load %arg3[%c0_20, %c2, %c0_21] : memref<1x264x128xf32, #tpu.memory_space<vmem>>, vector<1x192x128xf32>
    %20 = vector.shape_cast %19 : vector<1x192x128xf32> to vector<192x128xf32>
    %c2_22 = arith.constant 2 : index
    %c0_23 = arith.constant 0 : index
    %c0_24 = arith.constant 0 : index
    %21 = vector.load %arg4[%c2_22, %c0_23, %c0_24] : memref<9x128x128xf32, #tpu.memory_space<vmem>>, vector<1x128x128xf32>
    %22 = vector.shape_cast %21 : vector<1x128x128xf32> to vector<128x128xf32>
    %c0_25 = arith.constant 0 : index
    %c0_26 = arith.constant 0 : index
    %23 = vector.load %arg7[%c0_25, %c0_26] : memref<192x128xf32, #tpu.memory_space<vmem>>, vector<192x128xf32>
    %cst_27 = arith.constant dense<0.000000e+00> : vector<192x128xf32>
    %24 = tpu.matmul %20, %22, %cst_27 {dimension_numbers = #tpu.dot_dimension_numbers<[1], [0], [0], [1], [0, 0, 1, 1], [], []>} : vector<192x128xf32>, vector<128x128xf32>, vector<192x128xf32> -> vector<192x128xf32>
    %25 = arith.addf %23, %24 : vector<192x128xf32>
    %c0_28 = arith.constant 0 : index
    %c0_29 = arith.constant 0 : index
    %26 = vector.load %arg7[%c0_28, %c0_29] : memref<192x128xf32, #tpu.memory_space<vmem>>, vector<192x128xf32>
    tpu.vector_store %arg7[%c0_28, %c0_29], %25 {strides = array<i32>} : memref<192x128xf32, #tpu.memory_space<vmem>>, vector<192x128xf32>,
    %c0_30 = arith.constant 0 : index
    %c24 = arith.constant 24 : index
    %c0_31 = arith.constant 0 : index
    %27 = vector.load %arg3[%c0_30, %c24, %c0_31] : memref<1x264x128xf32, #tpu.memory_space<vmem>>, vector<1x192x128xf32>
    %28 = vector.shape_cast %27 : vector<1x192x128xf32> to vector<192x128xf32>
    %c3 = arith.constant 3 : index
    %c0_32 = arith.constant 0 : index
    %c0_33 = arith.constant 0 : index
    %29 = vector.load %arg4[%c3, %c0_32, %c0_33] : memref<9x128x128xf32, #tpu.memory_space<vmem>>, vector<1x128x128xf32>
    %30 = vector.shape_cast %29 : vector<1x128x128xf32> to vector<128x128xf32>
    %c0_34 = arith.constant 0 : index
    %c0_35 = arith.constant 0 : index
    %31 = vector.load %arg7[%c0_34, %c0_35] : memref<192x128xf32, #tpu.memory_space<vmem>>, vector<192x128xf32>
    %cst_36 = arith.constant dense<0.000000e+00> : vector<192x128xf32>
    %32 = tpu.matmul %28, %30, %cst_36 {dimension_numbers = #tpu.dot_dimension_numbers<[1], [0], [0], [1], [0, 0, 1, 1], [], []>} : vector<192x128xf32>, vector<128x128xf32>, vector<192x128xf32> -> vector<192x128xf32>
    %33 = arith.addf %31, %32 : vector<192x128xf32>
    %c0_37 = arith.constant 0 : index
    %c0_38 = arith.constant 0 : index
    %34 = vector.load %arg7[%c0_37, %c0_38] : memref<192x128xf32, #tpu.memory_space<vmem>>, vector<192x128xf32>
    tpu.vector_store %arg7[%c0_37, %c0_38], %33 {strides = array<i32>} : memref<192x128xf32, #tpu.memory_space<vmem>>, vector<192x128xf32>,
    %c0_39 = arith.constant 0 : index
    %c25 = arith.constant 25 : index
    %c0_40 = arith.constant 0 : index
    %35 = vector.load %arg3[%c0_39, %c25, %c0_40] : memref<1x264x128xf32, #tpu.memory_space<vmem>>, vector<1x192x128xf32>
    %36 = vector.shape_cast %35 : vector<1x192x128xf32> to vector<192x128xf32>
    %c4 = arith.constant 4 : index
    %c0_41 = arith.constant 0 : index
    %c0_42 = arith.constant 0 : index
    %37 = vector.load %arg4[%c4, %c0_41, %c0_42] : memref<9x128x128xf32, #tpu.memory_space<vmem>>, vector<1x128x128xf32>
    %38 = vector.shape_cast %37 : vector<1x128x128xf32> to vector<128x128xf32>
    %c0_43 = arith.constant 0 : index
    %c0_44 = arith.constant 0 : index
    %39 = vector.load %arg7[%c0_43, %c0_44] : memref<192x128xf32, #tpu.memory_space<vmem>>, vector<192x128xf32>
    %cst_45 = arith.constant dense<0.000000e+00> : vector<192x128xf32>
    %40 = tpu.matmul %36, %38, %cst_45 {dimension_numbers = #tpu.dot_dimension_numbers<[1], [0], [0], [1], [0, 0, 1, 1], [], []>} : vector<192x128xf32>, vector<128x128xf32>, vector<192x128xf32> -> vector<192x128xf32>
    %41 = arith.addf %39, %40 : vector<192x128xf32>
    %c0_46 = arith.constant 0 : index
    %c0_47 = arith.constant 0 : index
    %42 = vector.load %arg7[%c0_46, %c0_47] : memref<192x128xf32, #tpu.memory_space<vmem>>, vector<192x128xf32>
    tpu.vector_store %arg7[%c0_46, %c0_47], %41 {strides = array<i32>} : memref<192x128xf32, #tpu.memory_space<vmem>>, vector<192x128xf32>,
    %c0_48 = arith.constant 0 : index
    %c26 = arith.constant 26 : index
    %c0_49 = arith.constant 0 : index
    %43 = vector.load %arg3[%c0_48, %c26, %c0_49] : memref<1x264x128xf32, #tpu.memory_space<vmem>>, vector<1x192x128xf32>
    %44 = vector.shape_cast %43 : vector<1x192x128xf32> to vector<192x128xf32>
    %c5 = arith.constant 5 : index
    %c0_50 = arith.constant 0 : index
    %c0_51 = arith.constant 0 : index
    %45 = vector.load %arg4[%c5, %c0_50, %c0_51] : memref<9x128x128xf32, #tpu.memory_space<vmem>>, vector<1x128x128xf32>
    %46 = vector.shape_cast %45 : vector<1x128x128xf32> to vector<128x128xf32>
    %c0_52 = arith.constant 0 : index
    %c0_53 = arith.constant 0 : index
    %47 = vector.load %arg7[%c0_52, %c0_53] : memref<192x128xf32, #tpu.memory_space<vmem>>, vector<192x128xf32>
    %cst_54 = arith.constant dense<0.000000e+00> : vector<192x128xf32>
    %48 = tpu.matmul %44, %46, %cst_54 {dimension_numbers = #tpu.dot_dimension_numbers<[1], [0], [0], [1], [0, 0, 1, 1], [], []>} : vector<192x128xf32>, vector<128x128xf32>, vector<192x128xf32> -> vector<192x128xf32>
    %49 = arith.addf %47, %48 : vector<192x128xf32>
    %c0_55 = arith.constant 0 : index
    %c0_56 = arith.constant 0 : index
    %50 = vector.load %arg7[%c0_55, %c0_56] : memref<192x128xf32, #tpu.memory_space<vmem>>, vector<192x128xf32>
    tpu.vector_store %arg7[%c0_55, %c0_56], %49 {strides = array<i32>} : memref<192x128xf32, #tpu.memory_space<vmem>>, vector<192x128xf32>,
    %c0_57 = arith.constant 0 : index
    %c48 = arith.constant 48 : index
    %c0_58 = arith.constant 0 : index
    %51 = vector.load %arg3[%c0_57, %c48, %c0_58] : memref<1x264x128xf32, #tpu.memory_space<vmem>>, vector<1x192x128xf32>
    %52 = vector.shape_cast %51 : vector<1x192x128xf32> to vector<192x128xf32>
    %c6 = arith.constant 6 : index
    %c0_59 = arith.constant 0 : index
    %c0_60 = arith.constant 0 : index
    %53 = vector.load %arg4[%c6, %c0_59, %c0_60] : memref<9x128x128xf32, #tpu.memory_space<vmem>>, vector<1x128x128xf32>
    %54 = vector.shape_cast %53 : vector<1x128x128xf32> to vector<128x128xf32>
    %c0_61 = arith.constant 0 : index
    %c0_62 = arith.constant 0 : index
    %55 = vector.load %arg7[%c0_61, %c0_62] : memref<192x128xf32, #tpu.memory_space<vmem>>, vector<192x128xf32>
    %cst_63 = arith.constant dense<0.000000e+00> : vector<192x128xf32>
    %56 = tpu.matmul %52, %54, %cst_63 {dimension_numbers = #tpu.dot_dimension_numbers<[1], [0], [0], [1], [0, 0, 1, 1], [], []>} : vector<192x128xf32>, vector<128x128xf32>, vector<192x128xf32> -> vector<192x128xf32>
    %57 = arith.addf %55, %56 : vector<192x128xf32>
    %c0_64 = arith.constant 0 : index
    %c0_65 = arith.constant 0 : index
    %58 = vector.load %arg7[%c0_64, %c0_65] : memref<192x128xf32, #tpu.memory_space<vmem>>, vector<192x128xf32>
    tpu.vector_store %arg7[%c0_64, %c0_65], %57 {strides = array<i32>} : memref<192x128xf32, #tpu.memory_space<vmem>>, vector<192x128xf32>,
    %c0_66 = arith.constant 0 : index
    %c49 = arith.constant 49 : index
    %c0_67 = arith.constant 0 : index
    %59 = vector.load %arg3[%c0_66, %c49, %c0_67] : memref<1x264x128xf32, #tpu.memory_space<vmem>>, vector<1x192x128xf32>
    %60 = vector.shape_cast %59 : vector<1x192x128xf32> to vector<192x128xf32>
    %c7 = arith.constant 7 : index
    %c0_68 = arith.constant 0 : index
    %c0_69 = arith.constant 0 : index
    %61 = vector.load %arg4[%c7, %c0_68, %c0_69] : memref<9x128x128xf32, #tpu.memory_space<vmem>>, vector<1x128x128xf32>
    %62 = vector.shape_cast %61 : vector<1x128x128xf32> to vector<128x128xf32>
    %c0_70 = arith.constant 0 : index
    %c0_71 = arith.constant 0 : index
    %63 = vector.load %arg7[%c0_70, %c0_71] : memref<192x128xf32, #tpu.memory_space<vmem>>, vector<192x128xf32>
    %cst_72 = arith.constant dense<0.000000e+00> : vector<192x128xf32>
    %64 = tpu.matmul %60, %62, %cst_72 {dimension_numbers = #tpu.dot_dimension_numbers<[1], [0], [0], [1], [0, 0, 1, 1], [], []>} : vector<192x128xf32>, vector<128x128xf32>, vector<192x128xf32> -> vector<192x128xf32>
    %65 = arith.addf %63, %64 : vector<192x128xf32>
    %c0_73 = arith.constant 0 : index
    %c0_74 = arith.constant 0 : index
    %66 = vector.load %arg7[%c0_73, %c0_74] : memref<192x128xf32, #tpu.memory_space<vmem>>, vector<192x128xf32>
    tpu.vector_store %arg7[%c0_73, %c0_74], %65 {strides = array<i32>} : memref<192x128xf32, #tpu.memory_space<vmem>>, vector<192x128xf32>,
    %c0_75 = arith.constant 0 : index
    %c50 = arith.constant 50 : index
    %c0_76 = arith.constant 0 : index
    %67 = vector.load %arg3[%c0_75, %c50, %c0_76] : memref<1x264x128xf32, #tpu.memory_space<vmem>>, vector<1x192x128xf32>
    %68 = vector.shape_cast %67 : vector<1x192x128xf32> to vector<192x128xf32>
    %c8 = arith.constant 8 : index
    %c0_77 = arith.constant 0 : index
    %c0_78 = arith.constant 0 : index
    %69 = vector.load %arg4[%c8, %c0_77, %c0_78] : memref<9x128x128xf32, #tpu.memory_space<vmem>>, vector<1x128x128xf32>
    %70 = vector.shape_cast %69 : vector<1x128x128xf32> to vector<128x128xf32>
    %c0_79 = arith.constant 0 : index
    %c0_80 = arith.constant 0 : index
    %71 = vector.load %arg7[%c0_79, %c0_80] : memref<192x128xf32, #tpu.memory_space<vmem>>, vector<192x128xf32>
    %cst_81 = arith.constant dense<0.000000e+00> : vector<192x128xf32>
    %72 = tpu.matmul %68, %70, %cst_81 {dimension_numbers = #tpu.dot_dimension_numbers<[1], [0], [0], [1], [0, 0, 1, 1], [], []>} : vector<192x128xf32>, vector<128x128xf32>, vector<192x128xf32> -> vector<192x128xf32>
    %73 = arith.addf %71, %72 : vector<192x128xf32>
    %c0_82 = arith.constant 0 : index
    %c0_83 = arith.constant 0 : index
    %74 = vector.load %arg7[%c0_82, %c0_83] : memref<192x128xf32, #tpu.memory_space<vmem>>, vector<192x128xf32>
    tpu.vector_store %arg7[%c0_82, %c0_83], %73 {strides = array<i32>} : memref<192x128xf32, #tpu.memory_space<vmem>>, vector<192x128xf32>,
    %c0_i32_84 = arith.constant 0 : i32
    %75 = arith.cmpi eq, %arg2, %c0_i32_84 : i32
    %76 = arith.extui %75 : i1 to i32
    %c0_i32_85 = arith.constant 0 : i32
    %77 = arith.cmpi ne, %76, %c0_i32_85 : i32
    scf.if %77 {
      %c0_86 = arith.constant 0 : index
      %c0_87 = arith.constant 0 : index
      %78 = vector.load %arg7[%c0_86, %c0_87] : memref<192x128xf32, #tpu.memory_space<vmem>>, vector<192x128xf32>
      %c0_88 = arith.constant 0 : index
      %c0_89 = arith.constant 0 : index
      %79 = vector.load %arg5[%c0_88, %c0_89] : memref<1x128xf32, #tpu.memory_space<vmem>>, vector<1x128xf32>
      %80 = vector.broadcast %79 : vector<1x128xf32> to vector<192x128xf32>
      %81 = arith.addf %78, %80 : vector<192x128xf32>
      %82 = vector.shape_cast %81 : vector<192x128xf32> to vector<8x24x128xf32>
      %83 = vector.extract_strided_slice %82 {offsets = [0, 0, 0], sizes = [8, 16, 128], strides = [1, 1, 1]} : vector<8x24x128xf32> to vector<8x16x128xf32>
      %c0_90 = arith.constant 0 : index
      %c0_91 = arith.constant 0 : index
      %c0_92 = arith.constant 0 : index
      %c0_93 = arith.constant 0 : index
      %84 = vector.load %arg6[%c0_90, %c0_91, %c0_92, %c0_93] : memref<1x8x16x128xf32, #tpu.memory_space<vmem>>, vector<1x8x16x128xf32>
      %85 = vector.shape_cast %84 : vector<1x8x16x128xf32> to vector<8x16x128xf32>
      %86 = vector.shape_cast %83 : vector<8x16x128xf32> to vector<1x8x16x128xf32>
      tpu.vector_store %arg6[%c0_90, %c0_91, %c0_92, %c0_93], %86 {strides = array<i32>} : memref<1x8x16x128xf32, #tpu.memory_space<vmem>>, vector<1x8x16x128xf32>,
    } else {
    }
    return
  }
  func.func @transform_0(%arg0: i32, %arg1: i32, %arg2: i32) -> (i32, i32, i32) {
    %c0_i32 = arith.constant 0 : i32
    %c0_i32_0 = arith.constant 0 : i32
    return %arg0, %c0_i32, %arg2 : i32, i32, i32
  }
  func.func @transform_1(%arg0: i32, %arg1: i32, %arg2: i32) -> (i32, i32, i32) {
    %c0_i32 = arith.constant 0 : i32
    %c0_i32_0 = arith.constant 0 : i32
    return %c0_i32, %arg2, %arg1 : i32, i32, i32
  }
  func.func @transform_2(%arg0: i32, %arg1: i32, %arg2: i32) -> (i32, i32) {
    %c0_i32 = arith.constant 0 : i32
    %c0_i32_0 = arith.constant 0 : i32
    return %c0_i32, %arg1 : i32, i32
  }
  func.func @transform_3(%arg0: i32, %arg1: i32, %arg2: i32) -> (i32, i32, i32, i32) {
    %c0_i32 = arith.constant 0 : i32
    %c0_i32_0 = arith.constant 0 : i32
    %c0_i32_1 = arith.constant 0 : i32
    return %arg0, %c0_i32, %c0_i32_0, %arg1 : i32, i32, i32, i32
  }
}

</mosaic_0001>

<bundles_post_ra>
// kernel: tpu_custom_call.1
= control target key start
LH: loop header
LB: loop body
LE: loop exit
PB: predicated region body
PF: predicated region fallthrough
CT: control target
= control target key end

     0   :  { %8 = vsyncpa [#allocation4], 0  ;;  %s5554_s0 = inlined_call_operand.hbm [shape: f32[4,264,128], index: 0, kind: input, shape index: {}]   ;;  %s5555_s1 = inlined_call_operand.hbm [shape: f32[9,128,128], index: 1, kind: input, shape index: {}]   ;;  %s5556_s2 = inlined_call_operand.vmem [shape: f32[1,128], index: 2, kind: input, shape index: {}]   ;;  %s5557_s3 = inlined_call_operand.hbm [shape: f32[4,8,16,128], index: 3, kind: output, shape index: {}]  }
   0x1   :  { %10 = vsyncpa [#allocation4 + $0x1], 0 }
   0x2   :  { %11 = vsyncpa [#allocation7], 0 }
   0x3   :  { %12 = vsyncpa [#allocation5], 0 }
   0x4   :  { %14 = vsyncpa [#allocation5 + $0x1], 0  ;;  %s4760_s12 = smov 0   ;;  %s4762_s13 = smov 0  }
   0x5   :  { %s4764_s14 = smov 0   ;;  %s4766_s15 = smov 0  }
   0x6   :  { %s4768_s16 = smov 0   ;;  %s4770_s17 = smov 0  }
   0x7 LB: > { %s3150_s18 = sadd.s32 4294967295, %s4731_s17   ;;  %s3151_s19 = sadd.s32 4294967294, %s4731_s17   ;;  %s4731_s17 = sphi %s4770_s17, %s20_s17   ;;  %s4727_s16 = sphi %s4768_s16, %s5633_s16   ;;  %s4723_s15 = sphi %s4766_s15, %s5632_s15   ;;  %s4719_s14 = sphi %s4764_s14, %s5631_s14   ;;  %s4715_s13 = sphi %s4762_s13, %s5630_s13   ;;  %s4711_s12 = sphi %s4760_s12, %s5629_s12  }
   0x8   : > { %p61_p0 = scmp.ne.s32.totalorder %s4715_s13, %s4711_s12  ;;  %p4794_p1 = scmp.eq.s32.totalorder %s3150_s18, 0 }
   0x9   : > { %p4798_p2 = scmp.eq.s32.totalorder %s3150_s18, 3  ;;  %p147_p3 = scmp.eq.s32.totalorder %s3151_s19, 3 }
   0xa   : > { %s5580_s20 = scalar_select %p4794_p1, 1, 0 }
   0xb   : > { %s5581_s21 = scalar_select %p4798_p2, 1, 0 }
   0xc   : > { %p4804_p4 = por %p4794_p1, %p61_p0  ;;  %p3152_p5 = scmp.ge.s32.totalorder %s4731_s17, 1 }
   0xd   : > { %p4809_p6 = por %p147_p3, %p61_p0  ;;  %p154_p7 = scmp.lt.s32.totalorder %s4731_s17, 5 }
   0xe   : > { %s5582_s22 = scalar_select %p4804_p4, 1, 0 }
   0xf   : > { %s5583_s23 = scalar_select %p4809_p6, 1, 0 }
  0x10   : > { %p4814_p8 = pnand %p3152_p5, %p154_p7  ;;  %s4733_s25 = smov [#allocation6]  }
  0x11   : > { %s170_s26 = sshll.u32 %s4733_s25, 4  ;;  %s39_s28 = sadd.s32 1, %s4727_s16  ;;  %s171_s26 = int_to_ptr.vmem [resolvable:$true] %s170_s26 }
  0x12   : > { %s5584_s24 = scalar_select %p4814_p8, 1, 0 }
  0x13   : > { %p4518_p9 = pneg %p4814_p8  ;;  %s4587_s4 = scalar_lea.hbm %s5555_s1, 18432 }
  0x14   : > { %p4588_p11 = scmp.ne.s32.totalorder %s5555_s1, %s4587_s4  ;;  %p4594_p3 = scmp.lt.u32.totalorder %s4587_s4, %s5555_s1 }
  0x15   : > { %p4822_p10 = pnand %p4518_p9, %p4794_p1 }
  0x17   : > { %p4589_p12 = pneg %p4822_p10 }
  0x19   : > { %p4590_p13 = pnand %p4589_p12, %p4588_p11 }
  0x1b   : > { %p4591_p0 = pneg %p4590_p13 }
  0x1d   : > { %p4596_p5 = pnand %p4594_p3, %p4591_p0 }
  0x1f   : > { %4599 = shalt.err (!%p4596_p5)
}
  0x20   : > { %s4600_s9 = scalar_lea.vmem %s171_s26, 18432  ;;  %p4608_p1 = scmp.lt.s32.totalorder %s171_s26, %s171_s26 }
  0x21   : > { %p4601_p7 = scmp.ne.s32.totalorder %s171_s26, %s4600_s9  ;;  %p4609_p4 = scmp.lt.s32.totalorder %s4600_s9, %s4600_s9 }
  0x23   : > { %p4603_p9 = pnand %p4601_p7, %p4589_p12  ;;  %p4610_p8 = por %p4609_p4, %p4608_p1 }
  0x25   : > { %p4604_p6 = pneg %p4603_p9 }
  0x27   : > { %p4611_p2 = pnand %p4610_p8, %p4604_p6 }
  0x29   : > { %4614 = shalt.err (!%p4611_p2)
}
  0x2a   : > { %s4734_s10 = smov 128   ;;  %s4735_s11 = smov 8  }
  0x2b   : > { %4521 = dma.hbm_to_vmem [thread:$0]  (!%p4822_p10), %s5555_s1, 18432, %s171_s26, [#allocation7], %s4734_s10, %s4734_s10, %s4735_s11  }
  0x2c   : > { %p41_p1 = scmp.ge.s32.totalorder %s39_s28, 4  ;;  %s48_s25 = sadd.s32 1, %s4719_s14 }
  0x2d   : > { %p55_p2 = scmp.ne.s32.totalorder %s4719_s14, %s4715_s13  ;;  %p56_p4 = scmp.eq.s32.totalorder %s4731_s17, 0 }
  0x2e   : > { %s5635_s28 = smov (%p41_p1, %s39_s28), 0  ;;  %p5586_p8 = scmp.ne.s32.totalorder %s5581_s21, 0 }
  0x2f   : > { %p57_p6 = por %p56_p4, %p55_p2  ;;  %s43_s27 = ssub.s32 %s4727_s16, %s5635_s28 }
  0x30   : > { %p4854_p11 = por %p5586_p8, %p55_p2  ;;  %p4531_p12 = scmp.lt.s32.totalorder %s4731_s17, 4 }
  0x31   : > { %p46_p13 = scmp.eq.s32.totalorder %s43_s27, 0  ;;  %s190_s30 = sand.u32 1, %s4719_s14  }
  0x32   : > { %s4507_s4 = smul.u32 264, %s190_s30  ;;  %p4866_p10 = pnand %p4531_p12, %p57_p6 }
  0x33   : > { %s4863_s5 = scalar_select %p46_p13, %s4719_s14, %s48_s25  }
  0x34   : > { %s4508_s26 = smul.u32 4224, %s4727_s16  ;;  %s194_s6 = scalar_lea.vmem [#allocation3], %s4507_s4 }
  0x35   : > { %s202_s7 = sshll.u32 %s194_s6, 4  ;;  %s4877_s19 = scalar_lea.sflag [#allocation4], %s190_s30  ;;  %s4875_s7 = int_to_ptr.vmem [resolvable:$true] %s202_s7 }
  0x36   : > { %s4873_s18 = scalar_lea.hbm %s5554_s0, %s4508_s26  ;;  %p4617_p3 = pneg %p4866_p10 }
  0x37   : > { %s4615_s25 = scalar_lea.hbm %s4873_s18, 4224  ;;  %s4620_s26 = scalar_lea.hbm %s5554_s0, 16896 }
  0x38   : > { %p4616_p0 = scmp.ne.s32.totalorder %s4873_s18, %s4615_s25  ;;  %p4621_p9 = scmp.lt.u32.totalorder %s4873_s18, %s5554_s0 }
  0x39   : > { %p4622_p1 = scmp.lt.u32.totalorder %s4620_s26, %s4615_s25  ;;  %p4624_p4 = scmp.lt.u32.totalorder %s4615_s25, %s4873_s18 }
  0x3a   : > { %p4618_p5 = pnand %p4617_p3, %p4616_p0 }
  0x3b   : > { %p4623_p2 = por %p4622_p1, %p4621_p9 }
  0x3c   : > { %p4619_p7 = pneg %p4618_p5 }
  0x3d   : > { %p4625_p6 = por %p4624_p4, %p4623_p2 }
  0x3f   : > { %p4626_p8 = pnand %p4625_p6, %p4619_p7 }
  0x41   : > { %4629 = shalt.err (!%p4626_p8)
}
  0x42   : > { %s4630_s30 = scalar_lea.vmem %s4875_s7, 4224  ;;  %s4736_s21 = smov [#allocation3]  }
  0x43   : > { %p4631_p12 = scmp.ne.s32.totalorder %s4875_s7, %s4630_s30  ;;  %s4635_s27 = sshll.u32 %s4736_s21, 4  ;;  %s4636_s27 = int_to_ptr.vmem [resolvable:$false] %s4635_s27 }
  0x44   : > { %s4637_s4 = scalar_lea.vmem %s4636_s27, 8448  ;;  %p4638_p5 = scmp.lt.s32.totalorder %s4875_s7, %s4636_s27 }
  0x45   : > { %p4633_p13 = pnand %p4631_p12, %p4617_p3  ;;  %p4639_p9 = scmp.lt.s32.totalorder %s4637_s4, %s4630_s30 }
  0x47   : > { %p4634_p0 = pneg %p4633_p13  ;;  %p4640_p1 = por %p4639_p9, %p4638_p5 }
  0x49   : > { %p4641_p2 = pnand %p4640_p1, %p4634_p0 }
  0x4b   : > { %4644 = shalt.err (!%p4641_p2)
}
  0x4c   : > { %4525 = dma.hbm_to_vmem [thread:$0]  (!%p4866_p10), %s4873_s18, 4224, %s4875_s7, %s4877_s19, %s4734_s10, %s4734_s10, %s4735_s11  }
  0x4d   : > { %p5589_p3 = scmp.ne.s32.totalorder %s5584_s24, 0 }
  0x4f   : > { %214 = sbr.rel (%p5589_p3) target bundleno = 574 (0x23e), region = 32 }
  0x56   : > { %s4911_s25 = sand.u32 1, %s4715_s13   ;;  %p5590_p7 = scmp.ne.s32.totalorder %s5582_s22, 0 }
  0x57   : > { %s4509_s26 = smul.u32 264, %s4911_s25  ;;  %s217_s6 = scalar_lea.sflag [#allocation4], %s4911_s25 }
  0x59   : > { %s4915_s9 = scalar_lea.vmem [#allocation3], %s4509_s26 }
  0x5a   : > { %4698 = dma.done.wait (%p5590_p7), %s217_s6, 4224  }
  0x5b   : > { %4700 = vsyncadd (%p5590_p7), %s217_s6, 4294963072  ;;  %p5591_p10 = scmp.ne.s32.totalorder %s5580_s20, 0 }
  0x5d   : > { %4702 = dma.done.wait (%p5591_p10), [#allocation7], 18432  }
  0x5e   : > { %4704 = vsyncadd (%p5591_p10), [#allocation7], 4294948864  ;;  %v306_v0 = vld [vmem:[#allocation6] sm:$0xff]  ;;  %v307_v1 = vld [vmem:[#allocation6 + $0x8] sm:$0xff]  ;;  %s3159_s20 = sshll.u32 %s4911_s25, 7  ;;  %s3166_s11 = sshll.u32 %s4723_s15, 11 }
  0x5f   : > { %v1498_v2 = vld [vmem:[#allocation6 + $0x200] sm:$0xff]  ;;  %v4139_v3 = vpack.c.bf16 %v307_v1, %v306_v0  ;;  %v1499_v4 = vld [vmem:[#allocation6 + $0x208] sm:$0xff]  ;;  %v308_v5 = vld [vmem:[#allocation6 + $0x10] sm:$0xff]  ;;  %s5461_s10 = scalar_lea.vmem [#allocation8], %s3159_s20  ;;  %s5501_s19 = scalar_lea.hbm %s5557_s3, %s3166_s11 }
  0x60   : > { %v309_v6 = vld [vmem:[#allocation6 + $0x18] sm:$0xff]  ;;  %v4267_v7 = vpack.c.bf16 %v1499_v4, %v1498_v2  ;;  %v1500_v9 = vld [vmem:[#allocation6 + $0x210] sm:$0xff]  ;;  %v310_v11 = vld [vmem:[#allocation6 + $0x20] sm:$0xff]  ;;  %s3036_s7 = sshll.u32 %s5461_s10, 4  ;;  %s3022_s15 = scalar_lea.sflag [#allocation5], %s4911_s25  ;;  %s5503_s7 = int_to_ptr.vmem [resolvable:$true] %s3036_s7 }
  0x61   : > { %v4143_v8 = vpack.c.bf16 %v309_v6, %v308_v5  ;;  %v1501_v10 = vld [vmem:[#allocation6 + $0x218] sm:$0xff]  ;;  %4140 = vmatprep.subr.bf16.mxu1 %v4139_v3  ;;  %v311_v13 = vld [vmem:[#allocation6 + $0x28] sm:$0xff]  ;;  %v1502_v14 = vld [vmem:[#allocation6 + $0x220] sm:$0xff]  ;;  %s4645_s30 = scalar_lea.vmem %s5503_s7, 2048  ;;  %s4737_s21 = smov [#allocation8]  }
  0x62   : > { %v4271_v12 = vpack.c.bf16 %v1501_v10, %v1500_v9  ;;  %v1503_v15 = vld [vmem:[#allocation6 + $0x228] sm:$0xff]  ;;  %4268 = vmatprep.subr.bf16.mxu0 %v4267_v7  ;;  %4142 = vmatpush3.bf16.msra.mxu1 %v4139_v3  ;;  %v4147_v16 = vpack.c.bf16 %v311_v13, %v310_v11  ;;  %v312_v18 = vld [vmem:[#allocation6 + $0x30] sm:$0xff]  ;;  %v313_v19 = vld [vmem:[#allocation6 + $0x38] sm:$0xff]  ;;  %p4646_p4 = scmp.ne.s32.totalorder %s5503_s7, %s4645_s30  ;;  %s4649_s27 = sshll.u32 %s4737_s21, 4  ;;  %s4650_s27 = int_to_ptr.vmem [resolvable:$false] %s4649_s27 }
  0x63   : > { %4270 = vmatpush3.bf16.msra.mxu0 %v4267_v7  ;;  %4144 = vmatprep.subr.bf16.mxu1 %v4143_v8  ;;  %v4275_v17 = vpack.c.bf16 %v1503_v15, %v1502_v14  ;;  %v1504_v20 = vld [vmem:[#allocation6 + $0x230] sm:$0xff]  ;;  %v1505_v21 = vld [vmem:[#allocation6 + $0x238] sm:$0xff]  ;;  %v4151_v22 = vpack.c.bf16 %v313_v19, %v312_v18  ;;  %v314_v24 = vld [vmem:[#allocation6 + $0x40] sm:$0xff]  ;;  %s4651_s4 = scalar_lea.vmem %s4650_s27, 4096  ;;  %p4652_p12 = scmp.lt.s32.totalorder %s5503_s7, %s4650_s27 }
  0x64   : > { %4272 = vmatprep.subr.bf16.mxu0 %v4271_v12  ;;  %v4279_v23 = vpack.c.bf16 %v1505_v21, %v1504_v20  ;;  %v315_v25 = vld [vmem:[#allocation6 + $0x48] sm:$0xff]  ;;  %v282_v26 = vld [vmem:[%s4915_s9] sm:$0xff]  ;;  %v1506_v27 = vld [vmem:[#allocation6 + $0x240] sm:$0xff]  ;;  %p4647_p6 = pnand %p4646_p4, %p4854_p11  ;;  %p4653_p13 = scmp.lt.s32.totalorder %s4651_s4, %s4645_s30 }
  0x65   : > { %v1507_v28 = vld [vmem:[#allocation6 + $0x248] sm:$0xff]  ;;  %3559 = vmatprep.mubr.f32.mxu1 %v282_v26  ;;  %v4155_v30 = vpack.c.bf16 %v315_v25, %v314_v24  ;;  %v316_v32 = vld [vmem:[#allocation6 + $0x50] sm:$0xff]  ;;  %v317_v33 = vld [vmem:[#allocation6 + $0x58] sm:$0xff] }
  0x66   : > { %4146 = vmatpush3.bf16.msra.mxu1 %v4143_v8  ;;  %v4927_v29 = vld [vmem:[%s4915_s9 + $0x19] sm:$0xff]  ;;  %v4283_v31 = vpack.c.bf16 %v1507_v28, %v1506_v27  ;;  %v4159_v36 = vpack.c.bf16 %v317_v33, %v316_v32  ;;  %v318_v38 = vld [vmem:[#allocation6 + $0x60] sm:$0xff]  ;;  %p4648_p8 = pneg %p4647_p6  ;;  %p4654_p0 = por %p4653_p13, %p4652_p12 }
  0x67   : > { %4274 = vmatpush3.bf16.msra.mxu0 %v4271_v12  ;;  %4148 = vmatprep.subr.bf16.mxu1 %v4147_v16  ;;  %v1508_v34 = vld [vmem:[#allocation6 + $0x250] sm:$0xff]  ;;  %v1509_v35 = vld [vmem:[#allocation6 + $0x258] sm:$0xff]  ;;  %v319_v39 = vld [vmem:[#allocation6 + $0x68] sm:$0xff] }
  0x68   : > { %4276 = vmatprep.subr.bf16.mxu0 %v4275_v17  ;;  %3831 = vmatprep.mubr.f32.mxu0 %v4927_v29  ;;  %v4287_v37 = vpack.c.bf16 %v1509_v35, %v1508_v34  ;;  %v1510_v40 = vld [vmem:[#allocation6 + $0x260] sm:$0xff]  ;;  %v1511_v41 = vld [vmem:[#allocation6 + $0x268] sm:$0xff]  ;;  %v4163_v42 = vpack.c.bf16 %v319_v39, %v318_v38  ;;  %v320_v44 = vld [vmem:[#allocation6 + $0x70] sm:$0xff]  ;;  %p4655_p5 = pnand %p4654_p0, %p4648_p8 }
  0x69   : > { %v4291_v43 = vpack.c.bf16 %v1511_v41, %v1510_v40  ;;  %v321_v45 = vld [vmem:[#allocation6 + $0x78] sm:$0xff]  ;;  %v1512_v46 = vld [vmem:[#allocation6 + $0x270] sm:$0xff]  ;;  %v604_v50 = vld [vmem:[#allocation6 + $0x80] sm:$0xff] }
  0x6a   : > { %4150 = vmatpush3.bf16.msra.mxu1 %v4147_v16  ;;  %v1513_v47 = vld [vmem:[#allocation6 + $0x278] sm:$0xff]  ;;  %v4167_v48 = vpack.c.bf16 %v321_v45, %v320_v44  ;;  %v605_v51 = vld [vmem:[#allocation6 + $0x88] sm:$0xff]  ;;  %v1796_v52 = vld [vmem:[#allocation6 + $0x280] sm:$0xff] }
  0x6b   : > { %4278 = vmatpush3.bf16.msra.mxu0 %v4275_v17  ;;  %4152 = vmatprep.subr.bf16.mxu1 %v4151_v22  ;;  %v4295_v49 = vpack.c.bf16 %v1513_v47, %v1512_v46  ;;  %v1797_v53 = vld [vmem:[#allocation6 + $0x288] sm:$0xff]  ;;  %v4171_v54 = vpack.c.bf16 %v605_v51, %v604_v50  ;;  %v606_v56 = vld [vmem:[#allocation6 + $0x90] sm:$0xff]  ;;  %v607_v57 = vld [vmem:[#allocation6 + $0x98] sm:$0xff] }
  0x6c   : > { %4280 = vmatprep.subr.bf16.mxu0 %v4279_v23  ;;  %v4299_v55 = vpack.c.bf16 %v1797_v53, %v1796_v52  ;;  %v283_v58 = vld [vmem:[%s4915_s9 + $0x8] sm:$0xff]  ;;  %v1798_v59 = vld [vmem:[#allocation6 + $0x290] sm:$0xff]  ;;  %v284_v62 = vld [vmem:[%s4915_s9 + $0x10] sm:$0xff]  ;;  %v4175_v63 = vpack.c.bf16 %v607_v57, %v606_v56 }
  0x6d   : > { %v1799_v60 = vld [vmem:[#allocation6 + $0x298] sm:$0xff]  ;;  %v608_v2 = vld [vmem:[#allocation6 + $0xa0] sm:$0xff]  ;;  %v609_v3 = vld [vmem:[#allocation6 + $0xa8] sm:$0xff] }
  0x6e   : > { %4154 = vmatpush3.bf16.msra.mxu1 %v4151_v22  ;;  %v4932_v61 = vld [vmem:[%s4915_s9 + $0x21] sm:$0xff]  ;;  %v4936_v0 = vld [vmem:[%s4915_s9 + $0x29] sm:$0xff]  ;;  %v4303_v1 = vpack.c.bf16 %v1799_v60, %v1798_v59  ;;  %v4940_v4 = vld [vmem:[%s4915_s9 + $0x18] sm:$0xff]  ;;  %v4179_v10 = vpack.c.bf16 %v609_v3, %v608_v2 }
  0x6f   : > { %4282 = vmatpush3.bf16.msra.mxu0 %v4279_v23  ;;  %4156 = vmatprep.subr.bf16.mxu1 %v4155_v30  ;;  %v1800_v5 = vld [vmem:[#allocation6 + $0x2a0] sm:$0xff]  ;;  %v1801_v6 = vld [vmem:[#allocation6 + $0x2a8] sm:$0xff]  ;;  %v4946_v8 = vld [vmem:[%s4915_s9 + $0x20] sm:$0xff] }
  0x70   : > { %4284 = vmatprep.subr.bf16.mxu0 %v4283_v31  ;;  %v4943_v7 = vld [vmem:[%s4915_s9 + $0x31] sm:$0xff]  ;;  %v4950_v9 = vld [vmem:[%s4915_s9 + $0x39] sm:$0xff]  ;;  %v4307_v11 = vpack.c.bf16 %v1801_v6, %v1800_v5  ;;  %v4956_v14 = vld [vmem:[%s4915_s9 + $0x28] sm:$0xff] }
  0x71   : > { %v610_v12 = vld [vmem:[#allocation6 + $0xb0] sm:$0xff]  ;;  %v611_v13 = vld [vmem:[#allocation6 + $0xb8] sm:$0xff]  ;;  %v4963_v18 = vld [vmem:[%s4915_s9 + $0x30] sm:$0xff] }
  0x72   : > { %4158 = vmatpush3.bf16.msra.mxu1 %v4155_v30  ;;  %v1802_v15 = vld [vmem:[#allocation6 + $0x2b0] sm:$0xff]  ;;  %v1803_v16 = vld [vmem:[#allocation6 + $0x2b8] sm:$0xff]  ;;  %v4183_v20 = vpack.c.bf16 %v611_v13, %v610_v12  ;;  %v612_v22 = vld [vmem:[#allocation6 + $0xc0] sm:$0xff] }
  0x73   : > { %4286 = vmatpush3.bf16.msra.mxu0 %v4283_v31  ;;  %4160 = vmatprep.subr.bf16.mxu1 %v4159_v36  ;;  %v4960_v17 = vld [vmem:[%s4915_s9 + $0x41] sm:$0xff]  ;;  %v4966_v19 = vld [vmem:[%s4915_s9 + $0x49] sm:$0xff]  ;;  %v4311_v21 = vpack.c.bf16 %v1803_v16, %v1802_v15  ;;  %v4972_v24 = vld [vmem:[%s4915_s9 + $0x38] sm:$0xff] }
  0x74   : > { %4288 = vmatprep.subr.bf16.mxu0 %v4287_v37  ;;  %5592 = vst [vmem:[#allocation12_spill] sm:$0xff] %v4966_v19  ;;  %v613_v23 = vld [vmem:[#allocation6 + $0xc8] sm:$0xff]  ;;  %v1804_v25 = vld [vmem:[#allocation6 + $0x2c0] sm:$0xff]  ;;  %v4979_v28 = vld [vmem:[%s4915_s9 + $0x40] sm:$0xff] }
  0x75   : > { %v1805_v26 = vld [vmem:[#allocation6 + $0x2c8] sm:$0xff]  ;;  %v4187_v31 = vpack.c.bf16 %v613_v23, %v612_v22  ;;  %v614_v33 = vld [vmem:[#allocation6 + $0xd0] sm:$0xff]  ;;  %v615_v34 = vld [vmem:[#allocation6 + $0xd8] sm:$0xff] }
  0x76   : > { %4162 = vmatpush3.bf16.msra.mxu1 %v4159_v36  ;;  %v4976_v27 = vld [vmem:[%s4915_s9 + $0x51] sm:$0xff]  ;;  %v4982_v30 = vld [vmem:[%s4915_s9 + $0x59] sm:$0xff]  ;;  %v4315_v32 = vpack.c.bf16 %v1805_v26, %v1804_v25  ;;  %v4988_v35 = vld [vmem:[%s4915_s9 + $0x48] sm:$0xff]  ;;  %v4191_v41 = vpack.c.bf16 %v615_v34, %v614_v33 }
  0x77   : > { %4290 = vmatpush3.bf16.msra.mxu0 %v4287_v37  ;;  %4164 = vmatprep.subr.bf16.mxu1 %v4163_v42  ;;  %5593 = vst [vmem:[#allocation13_spill] sm:$0xff] %v4976_v27  ;;  %5594 = vst [vmem:[#allocation14_spill] sm:$0xff] %v4982_v30  ;;  %v1806_v36 = vld [vmem:[#allocation6 + $0x2d0] sm:$0xff]  ;;  %v1807_v37 = vld [vmem:[#allocation6 + $0x2d8] sm:$0xff] }
  0x78   : > { %4292 = vmatprep.subr.bf16.mxu0 %v4291_v43  ;;  %v4992_v38 = vld [vmem:[%s4915_s9 + $0x61] sm:$0xff]  ;;  %v4995_v39 = vld [vmem:[%s4915_s9 + $0x50] sm:$0xff]  ;;  %v5004_v45 = vld [vmem:[%s4915_s9 + $0x58] sm:$0xff] }
  0x79   : > { %5595 = vst [vmem:[#allocation15_spill] sm:$0xff] %v4992_v38  ;;  %v4998_v40 = vld [vmem:[%s4915_s9 + $0x69] sm:$0xff]  ;;  %v5014_v50 = vld [vmem:[%s4915_s9 + $0x79] sm:$0xff]  ;;  %v5072_v25 = vld [vmem:[%s4915_s9 + $0xb1] sm:$0xff] }
  0x7a   : > { %4166 = vmatpush3.bf16.msra.mxu1 %v4163_v42  ;;  %v4319_v42 = vpack.c.bf16 %v1807_v37, %v1806_v36  ;;  %v617_v44 = vld [vmem:[#allocation6 + $0xe8] sm:$0xff]  ;;  %v1808_v46 = vld [vmem:[#allocation6 + $0x2e0] sm:$0xff]  ;;  %v618_v53 = vld [vmem:[#allocation6 + $0xf0] sm:$0xff]  ;;  %5602 = vst [vmem:[#allocation22_spill] sm:$0xff] %v5072_v25 }
  0x7b   : > { %4294 = vmatpush3.bf16.msra.mxu0 %v4291_v43  ;;  %4168 = vmatprep.subr.bf16.mxu1 %v4167_v48  ;;  %v616_v43 = vld [vmem:[#allocation6 + $0xe0] sm:$0xff]  ;;  %v1809_v47 = vld [vmem:[#allocation6 + $0x2e8] sm:$0xff]  ;;  %v1810_v56 = vld [vmem:[#allocation6 + $0x2f0] sm:$0xff] }
  0x7c   : > { %4296 = vmatprep.subr.bf16.mxu0 %v4295_v49  ;;  %v4195_v51 = vpack.c.bf16 %v617_v44, %v616_v43  ;;  %v4323_v52 = vpack.c.bf16 %v1809_v47, %v1808_v46  ;;  %v1811_v57 = vld [vmem:[#allocation6 + $0x2f8] sm:$0xff]  ;;  %v5027_v59 = vld [vmem:[%s4915_s9 + $0x70] sm:$0xff]  ;;  %v5036_v3 = vld [vmem:[%s4915_s9 + $0x78] sm:$0xff] }
  0x7d   : > { %v5030_v60 = vld [vmem:[%s4915_s9 + $0x89] sm:$0xff]  ;;  %v5046_v12 = vld [vmem:[%s4915_s9 + $0x99] sm:$0xff]  ;;  %v5088_v33 = vld [vmem:[%s4915_s9 + $0xc1] sm:$0xff] }
  0x7e   : > { %4170 = vmatpush3.bf16.msra.mxu1 %v4167_v48  ;;  %v5008_v48 = vld [vmem:[%s4915_s9 + $0x71] sm:$0xff]  ;;  %5597 = vst [vmem:[#allocation17_spill] sm:$0xff] %v5030_v60  ;;  %5599 = vst [vmem:[#allocation19_spill] sm:$0xff] %v5046_v12  ;;  %v5052_v16 = vld [vmem:[%s4915_s9 + $0x88] sm:$0xff] }
  0x7f   : > { %4298 = vmatpush3.bf16.msra.mxu0 %v4295_v49  ;;  %4172 = vmatprep.subr.bf16.mxu1 %v4171_v54  ;;  %v5011_v49 = vld [vmem:[%s4915_s9 + $0x60] sm:$0xff]  ;;  %v903_v2 = vld [vmem:[#allocation6 + $0x108] sm:$0xff]  ;;  %v2094_v5 = vld [vmem:[#allocation6 + $0x300] sm:$0xff]  ;;  %5604 = vst [vmem:[#allocation24_spill] sm:$0xff] %v5088_v33 }
  0x80   : > { %4300 = vmatprep.subr.bf16.mxu0 %v4299_v55  ;;  %v2095_v6 = vld [vmem:[#allocation6 + $0x308] sm:$0xff]  ;;  %v5075_v26 = vld [vmem:[%s4915_s9 + $0xa0] sm:$0xff] }
  0x81   : > { %3560 = vmatmul.mubr.f32.vlgmr.msra.gmra.mrb[0].mxu1 %v283_v58  ;;  %v5024_v58 = vld [vmem:[%s4915_s9 + $0x81] sm:$0xff]  ;;  %v4331_v15 = vpack.c.bf16 %v2095_v6, %v2094_v5  ;;  %v5062_v22 = vld [vmem:[%s4915_s9 + $0xa9] sm:$0xff]  ;;  %v5068_v23 = vld [vmem:[%s4915_s9 + $0x98] sm:$0xff] }
  0x82   : > { %3832 = vmatmul.mubr.f32.vlgmr.msra.gmra.mrb[0].mxu0 %v4932_v61  ;;  %4174 = vmatpush3.bf16.msra.mxu1 %v4171_v54  ;;  %v619_v54 = vld [vmem:[#allocation6 + $0xf8] sm:$0xff]  ;;  %5596 = vst [vmem:[#allocation16_spill] sm:$0xff] %v5024_v58  ;;  %5601 = vst [vmem:[#allocation21_spill] sm:$0xff] %v5062_v22  ;;  %v5091_v34 = vld [vmem:[%s4915_s9 + $0xb0] sm:$0xff] }
  0x83   : > { %4302 = vmatpush3.bf16.msra.mxu0 %v4299_v55  ;;  %3562 = vmatprep.mubr.f32.mxu1 %v284_v62  ;;  %v5020_v55 = vld [vmem:[%s4915_s9 + $0x68] sm:$0xff]  ;;  %v4199_v62 = vpack.c.bf16 %v619_v54, %v618_v53  ;;  %v5100_v37 = vld [vmem:[%s4915_s9 + $0xb8] sm:$0xff] }
  0x84   : > { %3834 = vmatprep.mubr.f32.mxu0 %v4936_v0  ;;  %4176 = vmatprep.subr.bf16.mxu1 %v4175_v63  ;;  %v5094_v36 = vld [vmem:[%s4915_s9 + $0xc9] sm:$0xff]  ;;  %v5108_v43 = vld [vmem:[%s4915_s9 + $0x1a] sm:$0xff]  ;;  %v581_v54 = vld [vmem:[%s4915_s9 + $0x11] sm:$0xff] }
  0x85   : > { %3563 = vmatmul.mubr.f32.gmra.mrb[2].mxu1 %v4940_v4  ;;  %4304 = vmatprep.subr.bf16.mxu0 %v4303_v1  ;;  %5605 = vst [vmem:[#allocation25_spill] sm:$0xff] %v5094_v36  ;;  %v904_v44 = vld [vmem:[#allocation6 + $0x110] sm:$0xff]  ;;  %v905_v46 = vld [vmem:[#allocation6 + $0x118] sm:$0xff]  ;;  %v2099_v5 = vld [vmem:[#allocation6 + $0x328] sm:$0xff] }
  0x86   : > { %3835 = vmatmul.mubr.f32.gmra.mrb[2].mxu0 %v4943_v7  ;;  %3565 = vmatprep.mubr.f32.mxu1 %v4946_v8  ;;  %v580_v47 = vld [vmem:[%s4915_s9 + $0x9] sm:$0xff]  ;;  %v5123_v6 = vld [vmem:[%s4915_s9 + $0x32] sm:$0xff] }
  0x87   : > { %4178 = vmatpush3.bf16.msra.mxu1 %v4175_v63  ;;  %3837 = vmatprep.mubr.f32.mxu0 %v4950_v9  ;;  %v4327_v63 = vpack.c.bf16 %v1811_v57, %v1810_v56  ;;  %v5115_v53 = vld [vmem:[%s4915_s9 + $0x22] sm:$0xff]  ;;  %v4207_v56 = vpack.c.bf16 %v905_v46, %v904_v44  ;;  %v5119_v57 = vld [vmem:[%s4915_s9 + $0x2a] sm:$0xff] }
  0x88   : > { %4306 = vmatpush3.bf16.msra.mxu0 %v4303_v1  ;;  %4180 = vmatprep.subr.bf16.mxu1 %v4179_v10  ;;  %v902_v1 = vld [vmem:[#allocation6 + $0x100] sm:$0xff] }
  0x89   : > { %3566 = vmatmul.mubr.f32.gmra.mrb[4].mxu1 %v4956_v14  ;;  %4308 = vmatprep.subr.bf16.mxu0 %v4307_v11  ;;  %v4203_v13 = vpack.c.bf16 %v903_v2, %v902_v1  ;;  %v907_v1 = vld [vmem:[#allocation6 + $0x128] sm:$0xff]  ;;  %v2098_v2 = vld [vmem:[#allocation6 + $0x320] sm:$0xff] }
  0x8a   : > { %3838 = vmatmul.mubr.f32.gmra.mrb[4].mxu0 %v4960_v17  ;;  %3568 = vmatprep.mubr.f32.mxu1 %v4963_v18  ;;  %v4339_v46 = vpack.c.bf16 %v2099_v5, %v2098_v2  ;;  %v2103_v2 = vld [vmem:[#allocation6 + $0x348] sm:$0xff] }
  0x8b   : > { %3840 = vmatprep.mubr.f32.mxu0 %v4966_v19  ;;  %4182 = vmatpush3.bf16.msra.mxu1 %v4179_v10  ;;  %v5040_v10 = vld [vmem:[%s4915_s9 + $0x91] sm:$0xff]  ;;  %v5147_v5 = vld [vmem:[%s4915_s9 + $0x5a] sm:$0xff] }
  0x8c   : > { %4310 = vmatpush3.bf16.msra.mxu0 %v4307_v11  ;;  %4184 = vmatprep.subr.bf16.mxu1 %v4183_v20  ;;  %5598 = vst [vmem:[#allocation18_spill] sm:$0xff] %v5040_v10  ;;  %v5043_v11 = vld [vmem:[%s4915_s9 + $0x80] sm:$0xff] }
  0x8d   : > { %3569 = vmatmul.mubr.f32.gmra.mrb[6].mxu1 %v4972_v24  ;;  %4312 = vmatprep.subr.bf16.mxu0 %v4311_v21 }
  0x8e   : > { %3841 = vmatmul.mubr.f32.gmra.mrb[6].mxu0 %v4976_v27  ;;  %3571 = vmatprep.mubr.f32.mxu1 %v4979_v28 }
  0x8f   : > { %3843 = vmatprep.mubr.f32.mxu0 %v4982_v30  ;;  %4186 = vmatpush3.bf16.msra.mxu1 %v4183_v20  ;;  %v5056_v20 = vld [vmem:[%s4915_s9 + $0xa1] sm:$0xff] }
  0x90   : > { %4314 = vmatpush3.bf16.msra.mxu0 %v4311_v21  ;;  %4188 = vmatprep.subr.bf16.mxu1 %v4187_v31  ;;  %5600 = vst [vmem:[#allocation20_spill] sm:$0xff] %v5056_v20  ;;  %v5059_v21 = vld [vmem:[%s4915_s9 + $0x90] sm:$0xff] }
  0x91   : > { %3572 = vmatmul.mubr.f32.gmra.mrb[8].mxu1 %v4988_v35  ;;  %4316 = vmatprep.subr.bf16.mxu0 %v4315_v32 }
  0x92   : > { %3844 = vmatmul.mubr.f32.gmra.mrb[8].mxu0 %v4992_v38  ;;  %3574 = vmatprep.mubr.f32.mxu1 %v4995_v39 }
  0x93   : > { %3846 = vmatprep.mubr.f32.mxu0 %v4998_v40  ;;  %4190 = vmatpush3.bf16.msra.mxu1 %v4187_v31  ;;  %v5078_v31 = vld [vmem:[%s4915_s9 + $0xb9] sm:$0xff] }
  0x94   : > { %4318 = vmatpush3.bf16.msra.mxu0 %v4315_v32  ;;  %4192 = vmatprep.subr.bf16.mxu1 %v4191_v41  ;;  %5603 = vst [vmem:[#allocation23_spill] sm:$0xff] %v5078_v31  ;;  %v5084_v32 = vld [vmem:[%s4915_s9 + $0xa8] sm:$0xff] }
  0x95   : > { %3575 = vmatmul.mubr.f32.gmra.mrb[10].mxu1 %v5004_v45  ;;  %4320 = vmatprep.subr.bf16.mxu0 %v4319_v42 }
  0x96   : > { %3847 = vmatmul.mubr.f32.gmra.mrb[10].mxu0 %v5008_v48  ;;  %3577 = vmatprep.mubr.f32.mxu1 %v5011_v49 }
  0x97   : > { %3849 = vmatprep.mubr.f32.mxu0 %v5014_v50  ;;  %4194 = vmatpush3.bf16.msra.mxu1 %v4191_v41  ;;  %v5104_v41 = vld [vmem:[%s4915_s9 + $0xd1] sm:$0xff] }
  0x98   : > { %4322 = vmatpush3.bf16.msra.mxu0 %v4319_v42  ;;  %4196 = vmatprep.subr.bf16.mxu1 %v4195_v51  ;;  %5606 = vst [vmem:[#allocation26_spill] sm:$0xff] %v5104_v41  ;;  %v579_v42 = vld [vmem:[%s4915_s9 + $0x1] sm:$0xff] }
  0x99   : > { %3578 = vmatmul.mubr.f32.gmra.mrb[12].mxu1 %v5020_v55  ;;  %4324 = vmatprep.subr.bf16.mxu0 %v4323_v52 }
  0x9a   : > { %3850 = vmatmul.mubr.f32.gmra.mrb[12].mxu0 %v5024_v58  ;;  %3580 = vmatprep.mubr.f32.mxu1 %v5027_v59 }
  0x9b   : > { %3852 = vmatprep.mubr.f32.mxu0 %v5030_v60  ;;  %4198 = vmatpush3.bf16.msra.mxu1 %v4195_v51  ;;  %v2096_v51 = vld [vmem:[#allocation6 + $0x310] sm:$0xff] }
  0x9c   : > { %4326 = vmatpush3.bf16.msra.mxu0 %v4323_v52  ;;  %4200 = vmatprep.subr.bf16.mxu1 %v4199_v62  ;;  %v2097_v52 = vld [vmem:[#allocation6 + $0x318] sm:$0xff] }
  0x9d   : > { %3581 = vmatmul.mubr.f32.gmra.mrb[14].mxu1 %v5036_v3  ;;  %4328 = vmatprep.subr.bf16.mxu0 %v4327_v63 }
  0x9e   : > { %3853 = vmatmul.mubr.f32.gmra.mrb[14].mxu0 %v5040_v10  ;;  %3583 = vmatprep.mubr.f32.mxu1 %v5043_v11 }
  0x9f   : > { %3855 = vmatprep.mubr.f32.mxu0 %v5046_v12  ;;  %4202 = vmatpush3.bf16.msra.mxu1 %v4199_v62  ;;  %v4335_v62 = vpack.c.bf16 %v2097_v52, %v2096_v51  ;;  %v2101_v51 = vld [vmem:[#allocation6 + $0x338] sm:$0xff] }
  0xa0   : > { %4330 = vmatpush3.bf16.msra.mxu0 %v4327_v63  ;;  %4204 = vmatprep.subr.bf16.mxu1 %v4203_v13  ;;  %v906_v63 = vld [vmem:[#allocation6 + $0x120] sm:$0xff] }
  0xa1   : > { %3584 = vmatmul.mubr.f32.gmra.mrb[16].mxu1 %v5052_v16  ;;  %4332 = vmatprep.subr.bf16.mxu0 %v4331_v15  ;;  %v4211_v44 = vpack.c.bf16 %v907_v1, %v906_v63  ;;  %v5134_v52 = vld [vmem:[%s4915_s9 + $0x42] sm:$0xff] }
  0xa2   : > { %3856 = vmatmul.mubr.f32.gmra.mrb[16].mxu0 %v5056_v20  ;;  %3586 = vmatprep.mubr.f32.mxu1 %v5059_v21  ;;  %v910_v1 = vld [vmem:[#allocation6 + $0x140] sm:$0xff] }
  0xa3   : > { %3858 = vmatprep.mubr.f32.mxu0 %v5062_v22 }
  0xa5   : > { %3587 = vmatmul.mubr.f32.gmra.mrb[18].mxu1 %v5068_v23 }
  0xa6   : > { %3859 = vmatmul.mubr.f32.gmra.mrb[18].mxu0 %v5072_v25  ;;  %3589 = vmatprep.mubr.f32.mxu1 %v5075_v26 }
  0xa7   : > { %3861 = vmatprep.mubr.f32.mxu0 %v5078_v31 }
  0xa9   : > { %3590 = vmatmul.mubr.f32.gmra.mrb[20].mxu1 %v5084_v32 }
  0xaa   : > { %3862 = vmatmul.mubr.f32.gmra.mrb[20].mxu0 %v5088_v33  ;;  %3592 = vmatprep.mubr.f32.mxu1 %v5091_v34  ;;  %v2107_v33 = vld [vmem:[#allocation6 + $0x368] sm:$0xff] }
  0xab   : > { %3864 = vmatprep.mubr.f32.mxu0 %v5094_v36  ;;  %v2106_v36 = vld [vmem:[#allocation6 + $0x360] sm:$0xff] }
  0xad   : > { %3593 = vmatmul.mubr.f32.gmra.mrb[22].mxu1 %v5100_v37 }
  0xae   : > { %3865 = vmatmul.mubr.f32.gmra.mrb[22].mxu0 %v5104_v41  ;;  %3627 = vmatprep.mubr.f32.mxu1 %v579_v42  ;;  %v5127_v42 = vld [vmem:[%s4915_s9 + $0x3a] sm:$0xff] }
  0xaf   : > { %3899 = vmatprep.mubr.f32.mxu0 %v5108_v43  ;;  %v2105_v41 = vld [vmem:[#allocation6 + $0x358] sm:$0xff] }
  0xb1   : > { %3628 = vmatmul.mubr.f32.vlgmr.msra.gmra.mrb[0].mxu1 %v580_v47  ;;  %v908_v47 = vld [vmem:[#allocation6 + $0x130] sm:$0xff] }
  0xb2   : > { %3900 = vmatmul.mubr.f32.vlgmr.msra.gmra.mrb[0].mxu0 %v5115_v53  ;;  %4206 = vmatpush3.bf16.msra.mxu1 %v4203_v13  ;;  %v909_v13 = vld [vmem:[#allocation6 + $0x138] sm:$0xff] }
  0xb3   : > { %4334 = vmatpush3.bf16.msra.mxu0 %v4331_v15  ;;  %3630 = vmatprep.mubr.f32.mxu1 %v581_v54  ;;  %v2100_v15 = vld [vmem:[#allocation6 + $0x330] sm:$0xff]  ;;  %v5137_v54 = vld [vmem:[%s4915_s9 + $0x4a] sm:$0xff] }
  0xb4   : > { %3902 = vmatprep.mubr.f32.mxu0 %v5119_v57  ;;  %4208 = vmatprep.subr.bf16.mxu1 %v4207_v56  ;;  %v4343_v63 = vpack.c.bf16 %v2101_v51, %v2100_v15  ;;  %v913_v15 = vld [vmem:[#allocation6 + $0x158] sm:$0xff]  ;;  %v2104_v51 = vld [vmem:[#allocation6 + $0x350] sm:$0xff] }
  0xb5   : > { %3631 = vmatmul.mubr.f32.gmra.mrb[24].mxu1 %v4927_v29  ;;  %4336 = vmatprep.subr.bf16.mxu0 %v4335_v62  ;;  %v4215_v29 = vpack.c.bf16 %v909_v13, %v908_v47  ;;  %v912_v13 = vld [vmem:[#allocation6 + $0x150] sm:$0xff] }
  0xb6   : > { %3903 = vmatmul.mubr.f32.gmra.mrb[24].mxu0 %v5123_v6  ;;  %3633 = vmatprep.mubr.f32.mxu1 %v4932_v61  ;;  %v911_v61 = vld [vmem:[#allocation6 + $0x148] sm:$0xff] }
  0xb7   : > { %4210 = vmatpush3.bf16.msra.mxu1 %v4207_v56  ;;  %3905 = vmatprep.mubr.f32.mxu0 %v5127_v42  ;;  %v2102_v56 = vld [vmem:[#allocation6 + $0x340] sm:$0xff] }
  0xb8   : > { %4338 = vmatpush3.bf16.msra.mxu0 %v4335_v62  ;;  %4212 = vmatprep.subr.bf16.mxu1 %v4211_v44  ;;  %v5144_v62 = vld [vmem:[%s4915_s9 + $0x52] sm:$0xff]  ;;  %v4347_v47 = vpack.c.bf16 %v2103_v2, %v2102_v56 }
  0xb9   : > { %3634 = vmatmul.mubr.f32.gmra.mrb[26].mxu1 %v4936_v0  ;;  %4340 = vmatprep.subr.bf16.mxu0 %v4339_v46  ;;  %v4219_v0 = vpack.c.bf16 %v911_v61, %v910_v1  ;;  %v4223_v1 = vpack.c.bf16 %v913_v15, %v912_v13  ;;  %v4351_v61 = vpack.c.bf16 %v2105_v41, %v2104_v51  ;;  %v914_v56 = vld [vmem:[#allocation6 + $0x160] sm:$0xff]  ;;  %v915_v2 = vld [vmem:[#allocation6 + $0x168] sm:$0xff]  ;;  %v916_v15 = vld [vmem:[#allocation6 + $0x170] sm:$0xff] }
  0xba   : > { %3906 = vmatmul.mubr.f32.gmra.mrb[26].mxu0 %v5134_v52  ;;  %3636 = vmatprep.mubr.f32.mxu1 %v4943_v7  ;;  %v4227_v41 = vpack.c.bf16 %v915_v2, %v914_v56  ;;  %v4355_v13 = vpack.c.bf16 %v2107_v33, %v2106_v36  ;;  %v917_v51 = vld [vmem:[#allocation6 + $0x178] sm:$0xff]  ;;  %v1200_v56 = vld [vmem:[#allocation6 + $0x180] sm:$0xff]  ;;  %v1201_v2 = vld [vmem:[#allocation6 + $0x188] sm:$0xff] }
  0xbb   : > { %3908 = vmatprep.mubr.f32.mxu0 %v5137_v54  ;;  %4214 = vmatpush3.bf16.msra.mxu1 %v4211_v44  ;;  %v5154_v44 = vld [vmem:[%s4915_s9 + $0x62] sm:$0xff]  ;;  %v4231_v33 = vpack.c.bf16 %v917_v51, %v916_v15  ;;  %v5217_v51 = vld [vmem:[%s4915_s9 + $0xca] sm:$0xff] }
  0xbc   : > { %4342 = vmatpush3.bf16.msra.mxu0 %v4339_v46  ;;  %4216 = vmatprep.subr.bf16.mxu1 %v4215_v29  ;;  %v5157_v46 = vld [vmem:[%s4915_s9 + $0x6a] sm:$0xff]  ;;  %v5194_v15 = vld [vmem:[%s4915_s9 + $0xa2] sm:$0xff]  ;;  %5608 = vst [vmem:[#allocation28_spill] sm:$0xff] %v5217_v51 }
  0xbd   : > { %3637 = vmatmul.mubr.f32.gmra.mrb[6].mxu1 %v4950_v9  ;;  %4344 = vmatprep.subr.bf16.mxu0 %v4343_v63 }
  0xbe   : > { %3909 = vmatmul.mubr.f32.gmra.mrb[6].mxu0 %v5144_v62  ;;  %3639 = vmatprep.mubr.f32.mxu1 %v4960_v17 }
  0xbf   : > { %3911 = vmatprep.mubr.f32.mxu0 %v5147_v5  ;;  %4218 = vmatpush3.bf16.msra.mxu1 %v4215_v29  ;;  %v5164_v29 = vld [vmem:[%s4915_s9 + $0x72] sm:$0xff] }
  0xc0   : > { %4346 = vmatpush3.bf16.msra.mxu0 %v4343_v63  ;;  %4220 = vmatprep.subr.bf16.mxu1 %v4219_v0  ;;  %v5167_v63 = vld [vmem:[%s4915_s9 + $0x7a] sm:$0xff] }
  0xc1   : > { %3640 = vmatmul.mubr.f32.gmra.mrb[28].mxu1 %v4966_v19  ;;  %4348 = vmatprep.subr.bf16.mxu0 %v4347_v47  ;;  %v2109_v19 = vld [vmem:[#allocation6 + $0x378] sm:$0xff] }
  0xc2   : > { %3912 = vmatmul.mubr.f32.gmra.mrb[28].mxu0 %v5154_v44  ;;  %3642 = vmatprep.mubr.f32.mxu1 %v4976_v27  ;;  %v2108_v27 = vld [vmem:[#allocation6 + $0x370] sm:$0xff] }
  0xc3   : > { %3914 = vmatprep.mubr.f32.mxu0 %v5157_v46  ;;  %4222 = vmatpush3.bf16.msra.mxu1 %v4219_v0  ;;  %v5174_v0 = vld [vmem:[%s4915_s9 + $0x82] sm:$0xff]  ;;  %v4359_v36 = vpack.c.bf16 %v2109_v19, %v2108_v27  ;;  %v4235_v19 = vpack.c.bf16 %v1201_v2, %v1200_v56 }
  0xc4   : > { %4350 = vmatpush3.bf16.msra.mxu0 %v4347_v47  ;;  %4224 = vmatprep.subr.bf16.mxu1 %v4223_v1  ;;  %v5177_v47 = vld [vmem:[%s4915_s9 + $0x8a] sm:$0xff]  ;;  %v1202_v56 = vld [vmem:[#allocation6 + $0x190] sm:$0xff] }
  0xc5   : > { %3643 = vmatmul.mubr.f32.gmra.mrb[30].mxu1 %v4982_v30  ;;  %4352 = vmatprep.subr.bf16.mxu0 %v4351_v61  ;;  %v2393_v30 = vld [vmem:[#allocation6 + $0x388] sm:$0xff]  ;;  %v1203_v2 = vld [vmem:[#allocation6 + $0x198] sm:$0xff] }
  0xc6   : > { %3915 = vmatmul.mubr.f32.gmra.mrb[30].mxu0 %v5164_v29  ;;  %3645 = vmatprep.mubr.f32.mxu1 %v4992_v38  ;;  %v2392_v38 = vld [vmem:[#allocation6 + $0x380] sm:$0xff] }
  0xc7   : > { %3917 = vmatprep.mubr.f32.mxu0 %v5167_v63  ;;  %4226 = vmatpush3.bf16.msra.mxu1 %v4223_v1  ;;  %v5184_v1 = vld [vmem:[%s4915_s9 + $0x92] sm:$0xff]  ;;  %v4363_v27 = vpack.c.bf16 %v2393_v30, %v2392_v38  ;;  %v5207_v38 = vld [vmem:[%s4915_s9 + $0xba] sm:$0xff] }
  0xc8   : > { %4354 = vmatpush3.bf16.msra.mxu0 %v4351_v61  ;;  %4228 = vmatprep.subr.bf16.mxu1 %v4227_v41  ;;  %v5187_v61 = vld [vmem:[%s4915_s9 + $0x9a] sm:$0xff]  ;;  %v5204_v30 = vld [vmem:[%s4915_s9 + $0xb2] sm:$0xff] }
  0xc9   : > { %3646 = vmatmul.mubr.f32.gmra.mrb[12].mxu1 %v4998_v40  ;;  %4356 = vmatprep.subr.bf16.mxu0 %v4355_v13 }
  0xca   : > { %3918 = vmatmul.mubr.f32.gmra.mrb[12].mxu0 %v5174_v0  ;;  %3648 = vmatprep.mubr.f32.mxu1 %v5008_v48 }
  0xcb   : > { %3920 = vmatprep.mubr.f32.mxu0 %v5177_v47  ;;  %4230 = vmatpush3.bf16.msra.mxu1 %v4227_v41  ;;  %v5197_v41 = vld [vmem:[%s4915_s9 + $0xaa] sm:$0xff] }
  0xcc   : > { %4358 = vmatpush3.bf16.msra.mxu0 %v4355_v13  ;;  %4232 = vmatprep.subr.bf16.mxu1 %v4231_v33  ;;  %v5214_v13 = vld [vmem:[%s4915_s9 + $0xc2] sm:$0xff] }
  0xcd   : > { %3649 = vmatmul.mubr.f32.gmra.mrb[32].mxu1 %v5014_v50  ;;  %4360 = vmatprep.subr.bf16.mxu0 %v4359_v36  ;;  %5607 = vst [vmem:[#allocation27_spill] sm:$0xff] %v5214_v13 }
  0xce   : > { %3921 = vmatmul.mubr.f32.gmra.mrb[32].mxu0 %v5184_v1  ;;  %3651 = vmatprep.mubr.f32.mxu1 %v5024_v58  ;;  %v2397_v58 = vld [vmem:[#allocation6 + $0x3a8] sm:$0xff] }
  0xcf   : > { %3923 = vmatprep.mubr.f32.mxu0 %v5187_v61  ;;  %4234 = vmatpush3.bf16.msra.mxu1 %v4231_v33  ;;  %v5224_v33 = vld [vmem:[%s4915_s9 + $0xd2] sm:$0xff] }
  0xd0   : > { %4362 = vmatpush3.bf16.msra.mxu0 %v4359_v36  ;;  %4236 = vmatprep.subr.bf16.mxu1 %v4235_v19  ;;  %5609 = vst [vmem:[#allocation29_spill] sm:$0xff] %v5224_v33  ;;  %v877_v36 = vld [vmem:[%s4915_s9 + $0x2] sm:$0xff] }
  0xd1   : > { %3652 = vmatmul.mubr.f32.gmra.mrb[34].mxu1 %v5030_v60  ;;  %4364 = vmatprep.subr.bf16.mxu0 %v4363_v27  ;;  %v1205_v60 = vld [vmem:[#allocation6 + $0x1a8] sm:$0xff] }
  0xd2   : > { %3924 = vmatmul.mubr.f32.gmra.mrb[34].mxu0 %v5194_v15  ;;  %3654 = vmatprep.mubr.f32.mxu1 %v5040_v10  ;;  %v2395_v10 = vld [vmem:[#allocation6 + $0x398] sm:$0xff] }
  0xd3   : > { %3926 = vmatprep.mubr.f32.mxu0 %v5197_v41 }
  0xd5   : > { %3655 = vmatmul.mubr.f32.gmra.mrb[18].mxu1 %v5046_v12  ;;  %v2394_v12 = vld [vmem:[#allocation6 + $0x390] sm:$0xff] }
  0xd6   : > { %3927 = vmatmul.mubr.f32.gmra.mrb[18].mxu0 %v5204_v30  ;;  %3657 = vmatprep.mubr.f32.mxu1 %v5056_v20  ;;  %v878_v20 = vld [vmem:[%s4915_s9 + $0xa] sm:$0xff] }
  0xd7   : > { %3929 = vmatprep.mubr.f32.mxu0 %v5207_v38 }
  0xd9   : > { %3658 = vmatmul.mubr.f32.gmra.mrb[36].mxu1 %v5062_v22  ;;  %v4239_v22 = vpack.c.bf16 %v1203_v2, %v1202_v56  ;;  %v1206_v56 = vld [vmem:[#allocation6 + $0x1b0] sm:$0xff] }
  0xda   : > { %3930 = vmatmul.mubr.f32.gmra.mrb[36].mxu0 %v5214_v13  ;;  %3660 = vmatprep.mubr.f32.mxu1 %v5072_v25  ;;  %v879_v13 = vld [vmem:[%s4915_s9 + $0x12] sm:$0xff]  ;;  %v4367_v25 = vpack.c.bf16 %v2395_v10, %v2394_v12  ;;  %v2399_v12 = vld [vmem:[#allocation6 + $0x3b8] sm:$0xff] }
  0xdb   : > { %3932 = vmatprep.mubr.f32.mxu0 %v5217_v51  ;;  %v1204_v51 = vld [vmem:[#allocation6 + $0x1a0] sm:$0xff]  ;;  %v2398_v10 = vld [vmem:[#allocation6 + $0x3b0] sm:$0xff] }
  0xdd   : > { %3661 = vmatmul.mubr.f32.gmra.mrb[38].mxu1 %v5078_v31  ;;  %v2396_v31 = vld [vmem:[#allocation6 + $0x3a0] sm:$0xff] }
  0xde   : > { %3933 = vmatmul.mubr.f32.gmra.mrb[38].mxu0 %v5224_v33  ;;  %3695 = vmatprep.mubr.f32.mxu1 %v877_v36  ;;  %v4243_v36 = vpack.c.bf16 %v1205_v60, %v1204_v51  ;;  %v4371_v33 = vpack.c.bf16 %v2397_v58, %v2396_v31  ;;  %v4375_v60 = vpack.c.bf16 %v2399_v12, %v2398_v10  ;;  %v1209_v58 = vld [vmem:[#allocation6 + $0x1c8] sm:$0xff]  ;;  %v2400_v31 = vld [vmem:[#allocation6 + $0x3c0] sm:$0xff]  ;;  %v2403_v51 = vld [vmem:[#allocation6 + $0x3d8] sm:$0xff] }
  0xdf   : > { %3967 = vmatprep.mubr.f32.mxu0 %v4963_v18  ;;  %v2405_v10 = vld [vmem:[#allocation6 + $0x3e8] sm:$0xff] }
  0xe1   : > { %3696 = vmatmul.mubr.f32.vlgmr.msra.gmra.mrb[0].mxu1 %v878_v20  ;;  %v1207_v20 = vld [vmem:[#allocation6 + $0x1b8] sm:$0xff] }
  0xe2   : > { %3968 = vmatmul.mubr.f32.vlgmr.msra.gmra.mrb[0].mxu0 %v4972_v24  ;;  %4238 = vmatpush3.bf16.msra.mxu1 %v4235_v19  ;;  %v4247_v19 = vpack.c.bf16 %v1207_v20, %v1206_v56  ;;  %v1213_v56 = vld [vmem:[#allocation6 + $0x1e8] sm:$0xff]  ;;  %v2404_v20 = vld [vmem:[#allocation6 + $0x3e0] sm:$0xff] }
  0xe3   : > { %4366 = vmatpush3.bf16.msra.mxu0 %v4363_v27  ;;  %3698 = vmatprep.mubr.f32.mxu1 %v879_v13  ;;  %v1211_v27 = vld [vmem:[#allocation6 + $0x1d8] sm:$0xff]  ;;  %v2402_v13 = vld [vmem:[#allocation6 + $0x3d0] sm:$0xff] }
  0xe4   : > { %3970 = vmatprep.mubr.f32.mxu0 %v4979_v28  ;;  %4240 = vmatprep.subr.bf16.mxu1 %v4239_v22  ;;  %v4383_v2 = vpack.c.bf16 %v2403_v51, %v2402_v13  ;;  %v5263_v13 = vld [vmem:[%s4915_s9 + $0xc0] sm:$0xff]  ;;  %v5270_v51 = vld [vmem:[%s4915_s9 + $0xc8] sm:$0xff] }
  0xe5   : > { %3699 = vmatmul.mubr.f32.gmra.mrb[40].mxu1 %v5108_v43  ;;  %4368 = vmatprep.subr.bf16.mxu0 %v4367_v25  ;;  %v1208_v43 = vld [vmem:[#allocation6 + $0x1c0] sm:$0xff] }
  0xe6   : > { %3971 = vmatmul.mubr.f32.gmra.mrb[40].mxu0 %v4988_v35  ;;  %3701 = vmatprep.mubr.f32.mxu1 %v5115_v53  ;;  %v2401_v53 = vld [vmem:[#allocation6 + $0x3c8] sm:$0xff] }
  0xe7   : > { %4242 = vmatpush3.bf16.msra.mxu1 %v4239_v22  ;;  %3973 = vmatprep.mubr.f32.mxu0 %v4995_v39  ;;  %v4251_v22 = vpack.c.bf16 %v1209_v58, %v1208_v43  ;;  %v1215_v43 = vld [vmem:[#allocation6 + $0x1f8] sm:$0xff]  ;;  %v2406_v58 = vld [vmem:[#allocation6 + $0x3f0] sm:$0xff] }
  0xe8   : > { %4370 = vmatpush3.bf16.msra.mxu0 %v4367_v25  ;;  %4244 = vmatprep.subr.bf16.mxu1 %v4243_v36  ;;  %v4379_v25 = vpack.c.bf16 %v2401_v53, %v2400_v31  ;;  %v2407_v31 = vld [vmem:[#allocation6 + $0x3f8] sm:$0xff] }
  0xe9   : > { %3702 = vmatmul.mubr.f32.gmra.mrb[42].mxu1 %v5119_v57  ;;  %4372 = vmatprep.subr.bf16.mxu0 %v4371_v33  ;;  %v1210_v57 = vld [vmem:[#allocation6 + $0x1d0] sm:$0xff] }
  0xea   : > { %3974 = vmatmul.mubr.f32.gmra.mrb[42].mxu0 %v5004_v45  ;;  %3704 = vmatprep.mubr.f32.mxu1 %v5123_v6 }
  0xeb   : > { %3976 = vmatprep.mubr.f32.mxu0 %v5011_v49  ;;  %4246 = vmatpush3.bf16.msra.mxu1 %v4243_v36  ;;  %v1212_v36 = vld [vmem:[#allocation6 + $0x1e0] sm:$0xff] }
  0xec   : > { %4374 = vmatpush3.bf16.msra.mxu0 %v4371_v33  ;;  %4248 = vmatprep.subr.bf16.mxu1 %v4247_v19  ;;  %v4255_v33 = vpack.c.bf16 %v1211_v27, %v1210_v57  ;;  %v4259_v12 = vpack.c.bf16 %v1213_v56, %v1212_v36  ;;  %v2691_v57 = vld [vmem:[#allocation6 + $0x408] sm:$0xff]  ;;  %v2091_v36 = vld [vmem:[%s4915_s9 + $0xe0] sm:$0xff]  ;;  %v2092_v56 = vld [vmem:[%s4915_s9 + $0xe8] sm:$0xff] }
  0xed   : > { %3705 = vmatmul.mubr.f32.gmra.mrb[6].mxu1 %v5127_v42  ;;  %4376 = vmatprep.subr.bf16.mxu0 %v4375_v60 }
  0xee   : > { %3977 = vmatmul.mubr.f32.gmra.mrb[6].mxu0 %v5020_v55  ;;  %3707 = vmatprep.mubr.f32.mxu1 %v5134_v52 }
  0xef   : > { %3979 = vmatprep.mubr.f32.mxu0 %v5027_v59  ;;  %4250 = vmatpush3.bf16.msra.mxu1 %v4247_v19  ;;  %v4387_v19 = vpack.c.bf16 %v2405_v10, %v2404_v20  ;;  %v2692_v20 = vld [vmem:[#allocation6 + $0x410] sm:$0xff]  ;;  %v2693_v10 = vld [vmem:[#allocation6 + $0x418] sm:$0xff] }
  0xf0   : > { %4378 = vmatpush3.bf16.msra.mxu0 %v4375_v60  ;;  %4252 = vmatprep.subr.bf16.mxu1 %v4251_v22  ;;  %v1214_v60 = vld [vmem:[#allocation6 + $0x1f0] sm:$0xff] }
  0xf1   : > { %3708 = vmatmul.mubr.f32.gmra.mrb[44].mxu1 %v5137_v54  ;;  %4380 = vmatprep.subr.bf16.mxu0 %v4379_v25  ;;  %v4263_v53 = vpack.c.bf16 %v1215_v43, %v1214_v60  ;;  %v2695_v60 = vld [vmem:[#allocation6 + $0x428] sm:$0xff] }
  0xf2   : > { %3980 = vmatmul.mubr.f32.gmra.mrb[44].mxu0 %v5036_v3  ;;  %3710 = vmatprep.mubr.f32.mxu1 %v5144_v62 }
  0xf3   : > { %3982 = vmatprep.mubr.f32.mxu0 %v5043_v11  ;;  %4254 = vmatpush3.bf16.msra.mxu1 %v4251_v22  ;;  %v4391_v22 = vpack.c.bf16 %v2407_v31, %v2406_v58  ;;  %v5610_v58 = vld [vmem:[#allocation12_spill] sm:$0xff]  ;;  %v5612_v31 = vld [vmem:[#allocation14_spill] sm:$0xff] }
  0xf4   : > { %4382 = vmatpush3.bf16.msra.mxu0 %v4379_v25  ;;  %4256 = vmatprep.subr.bf16.mxu1 %v4255_v33  ;;  %v2690_v25 = vld [vmem:[#allocation6 + $0x400] sm:$0xff] }
  0xf5   : > { %3711 = vmatmul.mubr.f32.gmra.mrb[46].mxu1 %v5147_v5  ;;  %4384 = vmatprep.subr.bf16.mxu0 %v4383_v2  ;;  %v4395_v27 = vpack.c.bf16 %v2691_v57, %v2690_v25  ;;  %v2703_v25 = vld [vmem:[#allocation6 + $0x468] sm:$0xff] }
  0xf6   : > { %3983 = vmatmul.mubr.f32.gmra.mrb[46].mxu0 %v5052_v16  ;;  %3713 = vmatprep.mubr.f32.mxu1 %v5154_v44  ;;  %v5615_v57 = vld [vmem:[#allocation17_spill] sm:$0xff] }
  0xf7   : > { %3985 = vmatprep.mubr.f32.mxu0 %v5059_v21  ;;  %4258 = vmatpush3.bf16.msra.mxu1 %v4255_v33  ;;  %v5273_v33 = vld [vmem:[%s4915_s9 + $0xd0] sm:$0xff] }
  0xf8   : > { %4386 = vmatpush3.bf16.msra.mxu0 %v4383_v2  ;;  %4260 = vmatprep.subr.bf16.mxu1 %v4259_v12  ;;  %v2090_v2 = vld [vmem:[%s4915_s9 + $0xd8] sm:$0xff] }
  0xf9   : > { %3714 = vmatmul.mubr.f32.gmra.mrb[12].mxu1 %v5157_v46  ;;  %4388 = vmatprep.subr.bf16.mxu0 %v4387_v19 }
  0xfa   : > { %3986 = vmatmul.mubr.f32.gmra.mrb[12].mxu0 %v5068_v23  ;;  %3716 = vmatprep.mubr.f32.mxu1 %v5164_v29 }
  0xfb   : > { %3988 = vmatprep.mubr.f32.mxu0 %v5075_v26  ;;  %4262 = vmatpush3.bf16.msra.mxu1 %v4259_v12  ;;  %v4399_v12 = vpack.c.bf16 %v2693_v10, %v2692_v20 }
  0xfc   : > { %4390 = vmatpush3.bf16.msra.mxu0 %v4387_v19  ;;  %4264 = vmatprep.subr.bf16.mxu1 %v4263_v53  ;;  %v2694_v19 = vld [vmem:[#allocation6 + $0x420] sm:$0xff] }
  0xfd   : > { %3717 = vmatmul.mubr.f32.gmra.mrb[48].mxu1 %v5167_v63  ;;  %4392 = vmatprep.subr.bf16.mxu0 %v4391_v22  ;;  %v4403_v43 = vpack.c.bf16 %v2695_v60, %v2694_v19 }
  0xfe   : > { %3989 = vmatmul.mubr.f32.gmra.mrb[48].mxu0 %v5084_v32  ;;  %3719 = vmatprep.mubr.f32.mxu1 %v5174_v0 }
  0xff   : > { %3991 = vmatprep.mubr.f32.mxu0 %v5091_v34  ;;  %4266 = vmatpush3.bf16.msra.mxu1 %v4263_v53  ;;  %v2700_v53 = vld [vmem:[#allocation6 + $0x450] sm:$0xff] }
 0x100   : > { %4394 = vmatpush3.bf16.msra.mxu0 %v4391_v22  ;;  %4427 = vmatprep.subr.bf16.mxu1 %v4395_v27  ;;  %v2701_v22 = vld [vmem:[#allocation6 + $0x458] sm:$0xff] }
 0x101   : > { %3720 = vmatmul.mubr.f32.gmra.mrb[50].mxu1 %v5177_v47  ;;  %4396 = vmatprep.subr.bf16.mxu0 %v4395_v27 }
 0x102   : > { %3992 = vmatmul.mubr.f32.gmra.mrb[50].mxu0 %v5100_v37  ;;  %3722 = vmatprep.mubr.f32.mxu1 %v5184_v1 }
 0x103   : > { %3994 = vmatprep.mubr.f32.mxu0 %v5263_v13 }
 0x105   : > { %3723 = vmatmul.mubr.f32.gmra.mrb[18].mxu1 %v5187_v61 }
 0x106   : > { %3995 = vmatmul.mubr.f32.gmra.mrb[18].mxu0 %v5270_v51  ;;  %3725 = vmatprep.mubr.f32.mxu1 %v5194_v15 }
 0x107   : > { %3997 = vmatprep.mubr.f32.mxu0 %v5273_v33 }
 0x109   : > { %3726 = vmatmul.mubr.f32.gmra.mrb[52].mxu1 %v5197_v41 }
 0x10a   : > { %3998 = vmatmul.mubr.f32.gmra.mrb[52].mxu0 %v2090_v2  ;;  %3728 = vmatprep.mubr.f32.mxu1 %v5204_v30  ;;  %v2388_v2 = vld [vmem:[%s4915_s9 + $0xd9] sm:$0xff] }
 0x10b   : > { %4000 = vmatprep.mubr.f32.mxu0 %v2091_v36  ;;  %v2389_v36 = vld [vmem:[%s4915_s9 + $0xe1] sm:$0xff] }
 0x10d   : > { %3729 = vmatmul.mubr.f32.gmra.mrb[54].mxu1 %v5207_v38 }
 0x10e   : > { %4001 = vmatmul.mubr.f32.gmra.mrb[54].mxu0 %v2092_v56  ;;  %3763 = vmatprep.mubr.f32.mxu1 %v4940_v4  ;;  %v2696_v4 = vld [vmem:[#allocation6 + $0x430] sm:$0xff] }
 0x10f   : > { %4035 = vmatprep.mubr.f32.mxu0 %v4943_v7  ;;  %v2697_v7 = vld [vmem:[#allocation6 + $0x438] sm:$0xff] }
 0x111   : > { %3764 = vmatmul.mubr.f32.vlgmr.msra.gmra.mrb[0].mxu1 %v4946_v8  ;;  %v5611_v8 = vld [vmem:[#allocation13_spill] sm:$0xff] }
 0x112   : > { %4036 = vmatmul.mubr.f32.vlgmr.msra.gmra.mrb[0].mxu0 %v4950_v9  ;;  %4435 = vmatpush3.bf16.msra.mxu1 %v4395_v27  ;;  %v4407_v9 = vpack.c.bf16 %v2697_v7, %v2696_v4 }
 0x113   : > { %4398 = vmatpush3.bf16.msra.mxu0 %v4395_v27  ;;  %3766 = vmatprep.mubr.f32.mxu1 %v4956_v14  ;;  %v2698_v14 = vld [vmem:[#allocation6 + $0x440] sm:$0xff] }
 0x114   : > { %4038 = vmatprep.mubr.f32.mxu0 %v4960_v17  ;;  %4400 = vmatprep.subr.bf16.mxu0 %v4399_v12  ;;  %v2699_v17 = vld [vmem:[#allocation6 + $0x448] sm:$0xff]  ;;  %v5622_v27 = vld [vmem:[#allocation24_spill] sm:$0xff] }
 0x115   : > { %3767 = vmatmul.mubr.f32.gmra.mrb[56].mxu1 %v4963_v18  ;;  %4428 = vmatprep.subr.bf16.mxu1 %v4399_v12  ;;  %v5613_v18 = vld [vmem:[#allocation15_spill] sm:$0xff] }
 0x116   : > { %4039 = vmatmul.mubr.f32.gmra.mrb[56].mxu0 %v5610_v58  ;;  %3769 = vmatprep.mubr.f32.mxu1 %v4972_v24  ;;  %v4411_v24 = vpack.c.bf16 %v2699_v17, %v2698_v14 }
 0x117   : > { %4041 = vmatprep.mubr.f32.mxu0 %v5611_v8  ;;  %4402 = vmatpush3.bf16.msra.mxu0 %v4399_v12 }
 0x118   : > { %4436 = vmatpush3.bf16.msra.mxu1 %v4399_v12  ;;  %4404 = vmatprep.subr.bf16.mxu0 %v4403_v43 }
 0x119   : > { %3770 = vmatmul.mubr.f32.gmra.mrb[58].mxu1 %v4979_v28  ;;  %4429 = vmatprep.subr.bf16.mxu1 %v4403_v43  ;;  %v4415_v28 = vpack.c.bf16 %v2701_v22, %v2700_v53 }
 0x11a   : > { %4042 = vmatmul.mubr.f32.gmra.mrb[58].mxu0 %v5612_v31  ;;  %3772 = vmatprep.mubr.f32.mxu1 %v4988_v35  ;;  %v2702_v35 = vld [vmem:[#allocation6 + $0x460] sm:$0xff] }
 0x11b   : > { %4044 = vmatprep.mubr.f32.mxu0 %v5613_v18  ;;  %4406 = vmatpush3.bf16.msra.mxu0 %v4403_v43 }
 0x11c   : > { %4437 = vmatpush3.bf16.msra.mxu1 %v4403_v43  ;;  %4408 = vmatprep.subr.bf16.mxu0 %v4407_v9 }
 0x11d   : > { %3773 = vmatmul.mubr.f32.gmra.mrb[6].mxu1 %v4995_v39  ;;  %4430 = vmatprep.subr.bf16.mxu1 %v4407_v9  ;;  %v5614_v39 = vld [vmem:[#allocation16_spill] sm:$0xff] }
 0x11e   : > { %4045 = vmatmul.mubr.f32.gmra.mrb[6].mxu0 %v4998_v40  ;;  %3775 = vmatprep.mubr.f32.mxu1 %v5004_v45  ;;  %v4419_v40 = vpack.c.bf16 %v2703_v25, %v2702_v35  ;;  %v2704_v45 = vld [vmem:[#allocation6 + $0x470] sm:$0xff] }
 0x11f   : > { %4047 = vmatprep.mubr.f32.mxu0 %v5008_v48  ;;  %4410 = vmatpush3.bf16.msra.mxu0 %v4407_v9  ;;  %v2705_v48 = vld [vmem:[#allocation6 + $0x478] sm:$0xff] }
 0x120   : > { %4438 = vmatpush3.bf16.msra.mxu1 %v4407_v9  ;;  %4412 = vmatprep.subr.bf16.mxu0 %v4411_v24 }
 0x121   : > { %3776 = vmatmul.mubr.f32.gmra.mrb[60].mxu1 %v5011_v49  ;;  %4431 = vmatprep.subr.bf16.mxu1 %v4411_v24  ;;  %v5616_v49 = vld [vmem:[#allocation18_spill] sm:$0xff] }
 0x122   : > { %4048 = vmatmul.mubr.f32.gmra.mrb[60].mxu0 %v5014_v50  ;;  %3778 = vmatprep.mubr.f32.mxu1 %v5020_v55  ;;  %v4423_v50 = vpack.c.bf16 %v2705_v48, %v2704_v45  ;;  %v5617_v55 = vld [vmem:[#allocation19_spill] sm:$0xff] }
 0x123   : > { %4050 = vmatprep.mubr.f32.mxu0 %v5614_v39  ;;  %4414 = vmatpush3.bf16.msra.mxu0 %v4411_v24 }
 0x124   : > { %4439 = vmatpush3.bf16.msra.mxu1 %v4411_v24  ;;  %4416 = vmatprep.subr.bf16.mxu0 %v4415_v28 }
 0x125   : > { %3779 = vmatmul.mubr.f32.gmra.mrb[62].mxu1 %v5027_v59  ;;  %4432 = vmatprep.subr.bf16.mxu1 %v4415_v28  ;;  %v5618_v59 = vld [vmem:[#allocation20_spill] sm:$0xff] }
 0x126   : > { %4051 = vmatmul.mubr.f32.gmra.mrb[62].mxu0 %v5615_v57  ;;  %3781 = vmatprep.mubr.f32.mxu1 %v5036_v3  ;;  %v5619_v3 = vld [vmem:[#allocation21_spill] sm:$0xff] }
 0x127   : > { %4053 = vmatprep.mubr.f32.mxu0 %v5616_v49  ;;  %4418 = vmatpush3.bf16.msra.mxu0 %v4415_v28 }
 0x128   : > { %4440 = vmatpush3.bf16.msra.mxu1 %v4415_v28  ;;  %4420 = vmatprep.subr.bf16.mxu0 %v4419_v40 }
 0x129   : > { %3782 = vmatmul.mubr.f32.gmra.mrb[12].mxu1 %v5043_v11  ;;  %4433 = vmatprep.subr.bf16.mxu1 %v4419_v40  ;;  %v5620_v11 = vld [vmem:[#allocation22_spill] sm:$0xff] }
 0x12a   : > { %4054 = vmatmul.mubr.f32.gmra.mrb[12].mxu0 %v5617_v55  ;;  %3784 = vmatprep.mubr.f32.mxu1 %v5052_v16  ;;  %v5621_v16 = vld [vmem:[#allocation23_spill] sm:$0xff] }
 0x12b   : > { %4056 = vmatprep.mubr.f32.mxu0 %v5618_v59  ;;  %4422 = vmatpush3.bf16.msra.mxu0 %v4419_v40 }
 0x12c   : > { %4441 = vmatpush3.bf16.msra.mxu1 %v4419_v40  ;;  %4424 = vmatprep.subr.bf16.mxu0 %v4423_v50 }
 0x12d   : > { %3785 = vmatmul.mubr.f32.gmra.mrb[64].mxu1 %v5059_v21  ;;  %4434 = vmatprep.subr.bf16.mxu1 %v4423_v50  ;;  %v5623_v21 = vld [vmem:[#allocation25_spill] sm:$0xff] }
 0x12e   : > { %4057 = vmatmul.mubr.f32.gmra.mrb[64].mxu0 %v5619_v3  ;;  %3787 = vmatprep.mubr.f32.mxu1 %v5068_v23  ;;  %v5624_v23 = vld [vmem:[#allocation26_spill] sm:$0xff] }
 0x12f   : > { %4059 = vmatprep.mubr.f32.mxu0 %v5620_v11  ;;  %4426 = vmatpush3.bf16.msra.mxu0 %v4423_v50 }
 0x130   : > { %4442 = vmatpush3.bf16.msra.mxu1 %v4423_v50 }
 0x131   : > { %3788 = vmatmul.mubr.f32.gmra.mrb[66].mxu1 %v5075_v26  ;;  %v2390_v26 = vld [vmem:[%s4915_s9 + $0xe9] sm:$0xff] }
 0x132   : > { %4060 = vmatmul.mubr.f32.gmra.mrb[66].mxu0 %v5621_v16  ;;  %3790 = vmatprep.mubr.f32.mxu1 %v5084_v32  ;;  %v5625_v32 = vld [vmem:[#allocation27_spill] sm:$0xff] }
 0x133   : > { %4062 = vmatprep.mubr.f32.mxu0 %v5622_v27 }
 0x135   : > { %3791 = vmatmul.mubr.f32.gmra.mrb[18].mxu1 %v5091_v34  ;;  %v5626_v34 = vld [vmem:[#allocation28_spill] sm:$0xff] }
 0x136   : > { %4063 = vmatmul.mubr.f32.gmra.mrb[18].mxu0 %v5623_v21  ;;  %3793 = vmatprep.mubr.f32.mxu1 %v5100_v37  ;;  %v5627_v37 = vld [vmem:[#allocation29_spill] sm:$0xff] }
 0x137   : > { %4065 = vmatprep.mubr.f32.mxu0 %v5624_v23 }
 0x139   : > { %3794 = vmatmul.mubr.f32.gmra.mrb[68].mxu1 %v5263_v13 }
 0x13a   : > { %4066 = vmatmul.mubr.f32.gmra.mrb[68].mxu0 %v2388_v2  ;;  %3796 = vmatprep.mubr.f32.mxu1 %v5270_v51 }
 0x13b   : > { %4068 = vmatprep.mubr.f32.mxu0 %v2389_v36 }
 0x13d   : > { %3797 = vmatmul.mubr.f32.gmra.mrb[70].mxu1 %v5273_v33 }
 0x13e   : > { %4069 = vmatmul.mubr.f32.gmra.mrb[70].mxu0 %v2390_v26  ;;  %4121 = vmatprep.mubr.f32.mxu1 %v5184_v1 }
 0x13f   : > { %4103 = vmatprep.mubr.f32.mxu0 %v5123_v6  ;;  %v2686_v6 = vld [vmem:[%s4915_s9 + $0xda] sm:$0xff] }
 0x141   : > { %4122 = vmatmul.mubr.f32.vlgmr.msra.gmra.mrb[72].mxu1 %v5187_v61 }
 0x142   : > { %4104 = vmatmul.mubr.f32.vlgmr.msra.gmra.mrb[0].mxu0 %v5127_v42  ;;  %4124 = vmatprep.mubr.f32.mxu1 %v5194_v15  ;;  %v2687_v42 = vld [vmem:[%s4915_s9 + $0xe2] sm:$0xff] }
 0x143   : > { %4106 = vmatprep.mubr.f32.mxu0 %v5134_v52  ;;  %v2688_v52 = vld [vmem:[%s4915_s9 + $0xea] sm:$0xff] }
 0x145   : > { %4125 = vmatmul.mubr.f32.gmra.mrb[74].mxu1 %v5197_v41 }
 0x146   : > { %4107 = vmatmul.mubr.f32.gmra.mrb[72].mxu0 %v5137_v54  ;;  %4127 = vmatprep.mubr.f32.mxu1 %v5204_v30 }
 0x147   : > { %4109 = vmatprep.mubr.f32.mxu0 %v5144_v62 }
 0x149   : > { %4128 = vmatmul.mubr.f32.gmra.mrb[76].mxu1 %v5207_v38 }
 0x14a   : > { %4110 = vmatmul.mubr.f32.gmra.mrb[74].mxu0 %v5147_v5  ;;  %4130 = vmatprep.mubr.f32.mxu1 %v5625_v32 }
 0x14b   : > { %4112 = vmatprep.mubr.f32.mxu0 %v5154_v44 }
 0x14d   : > { %4131 = vmatmul.mubr.f32.gmra.mrb[78].mxu1 %v5626_v34 }
 0x14e   : > { %4113 = vmatmul.mubr.f32.gmra.mrb[6].mxu0 %v5157_v46  ;;  %4133 = vmatprep.mubr.f32.mxu1 %v5627_v37 }
 0x14f   : > { %4115 = vmatprep.mubr.f32.mxu0 %v5164_v29 }
 0x151   : > { %4134 = vmatmul.mubr.f32.gmra.mrb[80].mxu1 %v2686_v6 }
 0x152   : > { %4116 = vmatmul.mubr.f32.gmra.mrb[76].mxu0 %v5167_v63  ;;  %4136 = vmatprep.mubr.f32.mxu1 %v2687_v42 }
 0x153   : > { %4118 = vmatprep.mubr.f32.mxu0 %v5174_v0 }
 0x155   : > { %4137 = vmatmul.mubr.f32.gmra.mrb[82].mxu1 %v2688_v52 }
 0x156   : > { %4119 = vmatmul.mubr.f32.gmra.mrb[78].mxu0 %v5177_v47 }
 0x158   : > { %v3564_v54 = vpop.f32.mrb[2].mxu1 }
 0x159   : > { %v5357_v62 = vpop.f32.mrb[2].mxu0  ;;  %v422_v5 = vpop.f32.mrb[3].mxu1 }
 0x15a   : > { %v1614_v44 = vpop.f32.mrb[3].mxu0 }
 0x15c   : > { %v3567_v46 = vpop.f32.mrb[4].mxu1 }
 0x15d   : > { %v3839_v1 = vpop.f32.mrb[4].mxu0  ;;  %v432_v61 = vpop.f32.mrb[5].mxu1 }
 0x15e   : > { %v5359_v29 = vpop.f32.mrb[5].mxu0 }
 0x164   : > { %v3573_v15 = vpop.f32.mrb[8].mxu1 }
 0x165   : > { %v5361_v41 = vpop.f32.mrb[8].mxu0  ;;  %v452_v63 = vpop.f32.mrb[9].mxu1 }
 0x166   : > { %v1644_v30 = vpop.f32.mrb[9].mxu0 }
 0x168   : > { %v3576_v38 = vpop.f32.mrb[10].mxu1 }
 0x169   : > { %v3848_v0 = vpop.f32.mrb[10].mxu0  ;;  %v462_v13 = vpop.f32.mrb[11].mxu1 }
 0x16a   : > { %v5363_v51 = vpop.f32.mrb[11].mxu0 }
 0x170   : > { %v3582_v47 = vpop.f32.mrb[14].mxu1 }
 0x171   : > { %v5365_v33 = vpop.f32.mrb[14].mxu0  ;;  %v482_v56 = vpop.f32.mrb[15].mxu1 }
 0x172   : > { %v1674_v20 = vpop.f32.mrb[15].mxu0 }
 0x174   : > { %v3585_v10 = vpop.f32.mrb[16].mxu1 }
 0x175   : > { %v3857_v12 = vpop.f32.mrb[16].mxu0  ;;  %v492_v19 = vpop.f32.mrb[17].mxu1 }
 0x176   : > { %v5367_v60 = vpop.f32.mrb[17].mxu0 }
 0x17c   : > { %v3591_v43 = vpop.f32.mrb[20].mxu1 }
 0x17d   : > { %v5369_v4 = vpop.f32.mrb[20].mxu0  ;;  %v512_v7 = vpop.f32.mrb[21].mxu1 }
 0x17e   : > { %v1704_v58 = vpop.f32.mrb[21].mxu0 }
 0x180   : > { %v3594_v8 = vpop.f32.mrb[22].mxu1 }
 0x181   : > { %v3866_v9 = vpop.f32.mrb[22].mxu0  ;;  %v522_v14 = vpop.f32.mrb[23].mxu1 }
 0x182   : > { %v5371_v17 = vpop.f32.mrb[23].mxu0 }
 0x188   : > { %v3632_v31 = vpop.f32.mrb[24].mxu1 }
 0x189   : > { %v832_v18 = vadd.f32 %v3632_v31, %v3564_v54  ;;  %v5373_v24 = vpop.f32.mrb[24].mxu0  ;;  %v720_v53 = vpop.f32.mrb[25].mxu1 }
 0x18a   : > { %v1912_v22 = vpop.f32.mrb[25].mxu0 }
 0x18c   : > { %v3635_v28 = vpop.f32.mrb[26].mxu1 }
 0x18d   : > { %v3907_v35 = vpop.f32.mrb[26].mxu0  ;;  %v730_v25 = vpop.f32.mrb[27].mxu1 }
 0x18e   : > { %v833_v39 = vadd.f32 %v730_v25, %v432_v61  ;;  %v5375_v40 = vpop.f32.mrb[27].mxu0 }
 0x194   : > { %v3641_v45 = vpop.f32.mrb[28].mxu1 }
 0x195   : > { %v838_v48 = vadd.f32 %v3641_v45, %v3573_v15  ;;  %v5377_v57 = vpop.f32.mrb[28].mxu0  ;;  %v750_v49 = vpop.f32.mrb[29].mxu1 }
 0x196   : > { %v1942_v50 = vpop.f32.mrb[29].mxu0 }
 0x198   : > { %v3644_v55 = vpop.f32.mrb[30].mxu1 }
 0x199   : > { %v3916_v59 = vpop.f32.mrb[30].mxu0  ;;  %v760_v3 = vpop.f32.mrb[31].mxu1 }
 0x19a   : > { %v839_v11 = vadd.f32 %v760_v3, %v462_v13  ;;  %v5379_v16 = vpop.f32.mrb[31].mxu0 }
 0x1a0   : > { %v3650_v27 = vpop.f32.mrb[32].mxu1 }
 0x1a1   : > { %v844_v21 = vadd.f32 %v3650_v27, %v3582_v47  ;;  %v5381_v23 = vpop.f32.mrb[32].mxu0  ;;  %v780_v2 = vpop.f32.mrb[33].mxu1 }
 0x1a2   : > { %v1972_v36 = vpop.f32.mrb[33].mxu0 }
 0x1a4   : > { %v3653_v26 = vpop.f32.mrb[34].mxu1 }
 0x1a5   : > { %v3925_v32 = vpop.f32.mrb[34].mxu0  ;;  %v790_v34 = vpop.f32.mrb[35].mxu1 }
 0x1a6   : > { %v845_v37 = vadd.f32 %v790_v34, %v492_v19  ;;  %v5383_v6 = vpop.f32.mrb[35].mxu0 }
 0x1ac   : > { %v3659_v42 = vpop.f32.mrb[36].mxu1 }
 0x1ad   : > { %v850_v52 = vadd.f32 %v3659_v42, %v3591_v43  ;;  %v5385_v54 = vpop.f32.mrb[36].mxu0  ;;  %v810_v5 = vpop.f32.mrb[37].mxu1 }
 0x1ae   : > { %v2002_v44 = vpop.f32.mrb[37].mxu0 }
 0x1b0   : > { %v3662_v46 = vpop.f32.mrb[38].mxu1 }
 0x1b1   : > { %v3934_v1 = vpop.f32.mrb[38].mxu0  ;;  %v820_v61 = vpop.f32.mrb[39].mxu1 }
 0x1b2   : > { %v851_v15 = vadd.f32 %v820_v61, %v522_v14  ;;  %v5387_v63 = vpop.f32.mrb[39].mxu0 }
 0x1b8   : > { %v3700_v30 = vpop.f32.mrb[40].mxu1 }
 0x1b9   : > { %v1130_v38 = vadd.f32 %v3700_v30, %v832_v18  ;;  %v3972_v0 = vpop.f32.mrb[40].mxu0  ;;  %v1018_v13 = vpop.f32.mrb[41].mxu1 }
 0x1ba   : > { %v2210_v47 = vpop.f32.mrb[41].mxu0 }
 0x1bc   : > { %v3703_v56 = vpop.f32.mrb[42].mxu1 }
 0x1bd   : > { %v3975_v20 = vpop.f32.mrb[42].mxu0  ;;  %v1028_v10 = vpop.f32.mrb[43].mxu1 }
 0x1be   : > { %v1131_v12 = vadd.f32 %v1028_v10, %v833_v39  ;;  %v2220_v19 = vpop.f32.mrb[43].mxu0 }
 0x1c4   : > { %v3709_v43 = vpop.f32.mrb[44].mxu1 }
 0x1c5   : > { %v1136_v7 = vadd.f32 %v3709_v43, %v838_v48  ;;  %v3981_v58 = vpop.f32.mrb[44].mxu0  ;;  %v1048_v8 = vpop.f32.mrb[45].mxu1 }
 0x1c6   : > { %v2240_v9 = vpop.f32.mrb[45].mxu0 }
 0x1c8   : > { %v3712_v31 = vpop.f32.mrb[46].mxu1 }
 0x1c9   : > { %v3984_v53 = vpop.f32.mrb[46].mxu0  ;;  %v1058_v14 = vpop.f32.mrb[47].mxu1 }
 0x1ca   : > { %v1137_v22 = vadd.f32 %v1058_v14, %v839_v11  ;;  %v5389_v28 = vpop.f32.mrb[47].mxu0 }
 0x1d0   : > { %v3718_v18 = vpop.f32.mrb[48].mxu1 }
 0x1d1   : > { %v5391_v35 = vadd.f32 %v3718_v18, %v844_v21  ;;  %v5393_v25 = vpop.f32.mrb[48].mxu0  ;;  %v1078_v45 = vpop.f32.mrb[49].mxu1 }
 0x1d2   : > { %v2270_v49 = vpop.f32.mrb[49].mxu0 }
 0x1d4   : > { %v3721_v39 = vpop.f32.mrb[50].mxu1 }
 0x1d5   : > { %v3993_v50 = vpop.f32.mrb[50].mxu0  ;;  %v1088_v55 = vpop.f32.mrb[51].mxu1 }
 0x1d6   : > { %v5395_v48 = vadd.f32 %v1088_v55, %v845_v37  ;;  %v5397_v59 = vpop.f32.mrb[51].mxu0 }
 0x1dc   : > { %v3727_v3 = vpop.f32.mrb[52].mxu1 }
 0x1dd   : > { %v5399_v27 = vadd.f32 %v3727_v3, %v850_v52  ;;  %v5401_v11 = vpop.f32.mrb[52].mxu0  ;;  %v1108_v2 = vpop.f32.mrb[53].mxu1 }
 0x1de   : > { %v2300_v36 = vpop.f32.mrb[53].mxu0 }
 0x1e0   : > { %v3730_v21 = vpop.f32.mrb[54].mxu1 }
 0x1e1   : > { %v4002_v26 = vpop.f32.mrb[54].mxu0  ;;  %v1118_v32 = vpop.f32.mrb[55].mxu1 }
 0x1e2   : > { %v5403_v34 = vadd.f32 %v1118_v32, %v851_v15  ;;  %v5405_v42 = vpop.f32.mrb[55].mxu0 }
 0x1e4   : > { %v5407_v5 = vpop.f32.mrb[0].mxu1 }
 0x1e5   : > { %v5409_v37 = vpop.f32.mrb[1].mxu1 }
 0x1e8   : > { %v3768_v44 = vpop.f32.mrb[56].mxu1 }
 0x1e9   : > { %v1428_v46 = vadd.f32 %v3768_v44, %v1130_v38  ;;  %v4040_v1 = vpop.f32.mrb[56].mxu0  ;;  %v1316_v52 = vpop.f32.mrb[57].mxu1 }
 0x1ea   : > { %v2508_v61 = vpop.f32.mrb[57].mxu0 }
 0x1eb   : > { %v1726_v30 = vadd.f32 %v5357_v62, %v1428_v46 }
 0x1ec   : > { %v3771_v13 = vpop.f32.mrb[58].mxu1 }
 0x1ed   : > { %v2024_v47 = vadd.f32 %v5373_v24, %v1726_v30  ;;  %v4043_v56 = vpop.f32.mrb[58].mxu0  ;;  %v1326_v20 = vpop.f32.mrb[59].mxu1 }
 0x1ee   : > { %v1429_v15 = vadd.f32 %v1326_v20, %v1131_v12  ;;  %v2518_v10 = vpop.f32.mrb[59].mxu0 }
 0x1ef   : > { %v2322_v43 = vadd.f32 %v3972_v0, %v2024_v47 }
 0x1f0   : > { %v1727_v8 = vadd.f32 %v5359_v29, %v1429_v15  ;;  %v5414_v9 = vpop.f32.mrb[6].mxu1 }
 0x1f1   : > { %v5416_v31 = vadd.f32 %v4040_v1, %v2322_v43  ;;  %v5418_v38 = vpop.f32.mrb[7].mxu1 }
 0x1f2   : > { %v2025_v53 = vadd.f32 %v5375_v40, %v1727_v8 }
 0x1f4   : > { %v2323_v14 = vadd.f32 %v2220_v19, %v2025_v53  ;;  %v3777_v62 = vpop.f32.mrb[60].mxu1 }
 0x1f5   : > { %v1434_v18 = vadd.f32 %v3777_v62, %v1136_v7  ;;  %v4049_v45 = vpop.f32.mrb[60].mxu0  ;;  %v1346_v24 = vpop.f32.mrb[61].mxu1 }
 0x1f6   : > { %v5421_v49 = vadd.f32 %v2518_v10, %v2323_v14  ;;  %v2538_v12 = vpop.f32.mrb[61].mxu0 }
 0x1f7   : > { %v1732_v0 = vadd.f32 %v5361_v41, %v1434_v18 }
 0x1f8   : > { %v3780_v39 = vpop.f32.mrb[62].mxu1 }
 0x1f9   : > { %v2030_v29 = vadd.f32 %v5377_v57, %v1732_v0  ;;  %v4052_v50 = vpop.f32.mrb[62].mxu0  ;;  %v1356_v55 = vpop.f32.mrb[63].mxu1 }
 0x1fa   : > { %v1435_v3 = vadd.f32 %v1356_v55, %v1137_v22  ;;  %v2548_v2 = vpop.f32.mrb[63].mxu0 }
 0x1fb   : > { %v2328_v36 = vadd.f32 %v3981_v58, %v2030_v29 }
 0x1fc   : > { %v1733_v40 = vadd.f32 %v5363_v51, %v1435_v3  ;;  %v3783_v19 = vpop.f32.mrb[12].mxu1 }
 0x1fd   : > { %v5426_v21 = vadd.f32 %v4049_v45, %v2328_v36  ;;  %v4055_v7 = vpop.f32.mrb[12].mxu0  ;;  %v1366_v26 = vpop.f32.mrb[13].mxu1 }
 0x1fe   : > { %v2031_v32 = vadd.f32 %v5379_v16, %v1733_v40  ;;  %v4447_v44 = vadd.f32 %v4055_v7, %v3783_v19  ;;  %v2558_v46 = vpop.f32.mrb[13].mxu0 }
 0x1ff   : > { %v4449_v41 = vadd.f32 %v2558_v46, %v1366_v26 }
 0x200   : > { %v2329_v1 = vadd.f32 %v5389_v28, %v2031_v32  ;;  %v3786_v57 = vpop.f32.mrb[64].mxu1 }
 0x201   : > { %v1440_v52 = vadd.f32 %v3786_v57, %v5391_v35  ;;  %v4058_v22 = vpop.f32.mrb[64].mxu0  ;;  %v1376_v61 = vpop.f32.mrb[65].mxu1 }
 0x202   : > { %v5431_v58 = vadd.f32 %v2548_v2, %v2329_v1  ;;  %v2568_v51 = vpop.f32.mrb[65].mxu0 }
 0x203   : > { %v1738_v30 = vadd.f32 %v5365_v33, %v1440_v52 }
 0x204   : > { %v3789_v13 = vpop.f32.mrb[66].mxu1 }
 0x205   : > { %v2036_v47 = vadd.f32 %v5381_v23, %v1738_v30  ;;  %v4061_v56 = vpop.f32.mrb[66].mxu0  ;;  %v1386_v16 = vpop.f32.mrb[67].mxu1 }
 0x206   : > { %v1441_v20 = vadd.f32 %v1386_v16, %v5395_v48  ;;  %v2578_v15 = vpop.f32.mrb[67].mxu0 }
 0x207   : > { %v2334_v28 = vadd.f32 %v5393_v25, %v2036_v47 }
 0x208   : > { %v1739_v10 = vadd.f32 %v5367_v60, %v1441_v20  ;;  %v3792_v35 = vpop.f32.mrb[18].mxu1 }
 0x209   : > { %v2632_v43 = vadd.f32 %v4058_v22, %v2334_v28  ;;  %v4064_v8 = vpop.f32.mrb[18].mxu0  ;;  %v1396_v53 = vpop.f32.mrb[19].mxu1 }
 0x20a   : > { %v2037_v14 = vadd.f32 %v5383_v6, %v1739_v10  ;;  %v4451_v62 = vadd.f32 %v4064_v8, %v3792_v35  ;;  %v2588_v33 = vpop.f32.mrb[19].mxu0 }
 0x20b   : > { %v5439_v18 = vadd.f32 %v2588_v33, %v1396_v53 }
 0x20c   : > { %v2335_v23 = vadd.f32 %v5397_v59, %v2037_v14  ;;  %v3795_v45 = vpop.f32.mrb[68].mxu1 }
 0x20d   : > { %v1446_v48 = vadd.f32 %v3795_v45, %v5399_v27  ;;  %v4067_v24 = vpop.f32.mrb[68].mxu0  ;;  %v1406_v25 = vpop.f32.mrb[69].mxu1  ;;  %v5452_v27 = vld [vmem:[%s5556_s2] ss:$0 sm:$0xff] }
 0x20e   : > { %v2633_v12 = vadd.f32 %v2578_v15, %v2335_v23  ;;  %v2598_v60 = vpop.f32.mrb[69].mxu0 }
 0x20f   : > { %v1744_v0 = vadd.f32 %v5369_v4, %v1446_v48 }
 0x210   : > { %v3798_v39 = vpop.f32.mrb[70].mxu1 }
 0x211   : > { %v2042_v29 = vadd.f32 %v5385_v54, %v1744_v0  ;;  %v4070_v6 = vpop.f32.mrb[70].mxu0  ;;  %v1416_v50 = vpop.f32.mrb[71].mxu1 }
 0x212   : > { %v1447_v55 = vadd.f32 %v1416_v50, %v5403_v34  ;;  %v2608_v3 = vpop.f32.mrb[71].mxu0 }
 0x213   : > { %v2340_v2 = vadd.f32 %v5401_v11, %v2042_v29 }
 0x214   : > { %v1745_v59 = vadd.f32 %v5371_v17, %v1447_v55  ;;  %v4123_v36 = vpop.f32.mrb[72].mxu1 }
 0x215   : > { %v2638_v4 = vadd.f32 %v4067_v24, %v2340_v2  ;;  %v4105_v40 = vpop.f32.mrb[0].mxu0  ;;  %v4448_v19 = vadd.f32 %v4447_v44, %v4123_v36  ;;  %v2856_v54 = vpop.f32.mrb[73].mxu1 }
 0x216   : > { %v2043_v7 = vadd.f32 %v5387_v63, %v1745_v59  ;;  %v4443_v34 = vadd.f32 %v4105_v40, %v5407_v5  ;;  %v2796_v26 = vpop.f32.mrb[1].mxu0  ;;  %v4450_v32 = vadd.f32 %v4449_v41, %v2856_v54 }
 0x217   : > { %v2998_v11 = vadd.f32 %v4448_v19, %v5452_v27  ;;  %v4444_v17 = vadd.f32 %v2796_v26, %v5409_v37 }
 0x218   : > { %v2341_v46 = vadd.f32 %v5405_v42, %v2043_v7  ;;  %v2990_v1 = vadd.f32 %v4443_v34, %v5452_v27  ;;  %v2997_v57 = vadd.f32 %v4450_v32, %v5452_v27  ;;  %v4126_v52 = vpop.f32.mrb[74].mxu1 }
 0x219   : > { %3014 = vst [vmem:[%s5461_s10 + $0x48] sm:$0xff] %v2998_v11  ;;  %v2989_v63 = vadd.f32 %v4444_v17, %v5452_v27  ;;  %v4108_v5 = vpop.f32.mrb[72].mxu0  ;;  %v2930_v37 = vadd.f32 %v4126_v52, %v2632_v43  ;;  %v2866_v44 = vpop.f32.mrb[75].mxu1 }
 0x21a   : > { %v2639_v42 = vadd.f32 %v2608_v3, %v2341_v46  ;;  %3006 = vst [vmem:[%s5461_s10 + $0x8] sm:$0xff] %v2990_v1  ;;  %3013 = vst [vmem:[%s5461_s10 + $0x40] sm:$0xff] %v2997_v57  ;;  %v2918_v41 = vadd.f32 %v4108_v5, %v5416_v31  ;;  %v2806_v22 = vpop.f32.mrb[73].mxu0 }
 0x21b   : > { %3005 = vst [vmem:[%s5461_s10] sm:$0xff] %v2989_v63  ;;  %v2999_v61 = vadd.f32 %v5452_v27, %v2930_v37 }
 0x21c   : > { %v2991_v51 = vadd.f32 %v5452_v27, %v2918_v41  ;;  %v4129_v30 = vpop.f32.mrb[76].mxu1 }
 0x21d   : > { %3015 = vst [vmem:[%s5461_s10 + $0x50] sm:$0xff] %v2999_v61  ;;  %v4111_v13 = vpop.f32.mrb[74].mxu0  ;;  %v2876_v47 = vpop.f32.mrb[77].mxu1 }
 0x21e   : > { %3007 = vst [vmem:[%s5461_s10 + $0x10] sm:$0xff] %v2991_v51  ;;  %v2816_v56 = vpop.f32.mrb[75].mxu0  ;;  %v2931_v16 = vadd.f32 %v2876_v47, %v2633_v12 }
 0x21f   : > { %v2919_v20 = vadd.f32 %v2816_v56, %v5421_v49 }
 0x220   : > { %v3000_v15 = vadd.f32 %v5452_v27, %v2931_v16  ;;  %v4132_v31 = vpop.f32.mrb[78].mxu1 }
 0x221   : > { %v2992_v28 = vadd.f32 %v5452_v27, %v2919_v20  ;;  %v4114_v10 = vpop.f32.mrb[6].mxu0  ;;  %v4452_v35 = vadd.f32 %v4451_v62, %v4132_v31  ;;  %v2886_v43 = vpop.f32.mrb[79].mxu1 }
 0x222   : > { %3016 = vst [vmem:[%s5461_s10 + $0x58] sm:$0xff] %v3000_v15  ;;  %v4445_v8 = vadd.f32 %v4114_v10, %v5414_v9  ;;  %v2826_v53 = vpop.f32.mrb[7].mxu0  ;;  %v4454_v14 = vadd.f32 %v5439_v18, %v2886_v43 }
 0x223   : > { %3008 = vst [vmem:[%s5461_s10 + $0x18] sm:$0xff] %v2992_v28  ;;  %v3002_v49 = vadd.f32 %v4452_v35, %v5452_v27  ;;  %v4446_v33 = vadd.f32 %v2826_v53, %v5418_v38 }
 0x224   : > { %v2994_v23 = vadd.f32 %v4445_v8, %v5452_v27  ;;  %v3001_v62 = vadd.f32 %v4454_v14, %v5452_v27  ;;  %v4135_v45 = vpop.f32.mrb[80].mxu1 }
 0x225   : > { %3018 = vst [vmem:[%s5461_s10 + $0x68] sm:$0xff] %v3002_v49  ;;  %v2993_v48 = vadd.f32 %v4446_v33, %v5452_v27  ;;  %v4117_v9 = vpop.f32.mrb[76].mxu0  ;;  %v2936_v18 = vadd.f32 %v4135_v45, %v2638_v4  ;;  %v2896_v24 = vpop.f32.mrb[81].mxu1 }
 0x226   : > { %3010 = vst [vmem:[%s5461_s10 + $0x28] sm:$0xff] %v2994_v23  ;;  %3017 = vst [vmem:[%s5461_s10 + $0x60] sm:$0xff] %v3001_v62  ;;  %v2924_v25 = vadd.f32 %v4117_v9, %v5426_v21  ;;  %v2836_v38 = vpop.f32.mrb[77].mxu0 }
 0x227   : > { %3009 = vst [vmem:[%s5461_s10 + $0x20] sm:$0xff] %v2993_v48  ;;  %v3003_v12 = vadd.f32 %v5452_v27, %v2936_v18 }
 0x228   : > { %v2995_v60 = vadd.f32 %v5452_v27, %v2924_v25  ;;  %v4138_v0 = vpop.f32.mrb[82].mxu1 }
 0x229   : > { %3019 = vst [vmem:[%s5461_s10 + $0x70] sm:$0xff] %v3003_v12  ;;  %v4120_v39 = vpop.f32.mrb[78].mxu0  ;;  %v2906_v29 = vpop.f32.mrb[83].mxu1 }
 0x22a   : > { %3011 = vst [vmem:[%s5461_s10 + $0x30] sm:$0xff] %v2995_v60  ;;  %v2846_v6 = vpop.f32.mrb[79].mxu0  ;;  %v2937_v50 = vadd.f32 %v2906_v29, %v2639_v42 }
 0x22b   : > { %v2925_v21 = vadd.f32 %v2846_v6, %v5431_v58 }
 0x22c   : > { %v3004_v55 = vadd.f32 %v5452_v27, %v2937_v50 }
 0x22d   : > { %v2996_v3 = vadd.f32 %v5452_v27, %v2925_v21 }
 0x22e   : > { %3020 = vst [vmem:[%s5461_s10 + $0x78] sm:$0xff] %v3004_v55 }
 0x22f   : > { %3012 = vst [vmem:[%s5461_s10 + $0x38] sm:$0xff] %v2996_v3 }
 0x230   : > { %4658 = shalt.err (!%p4655_p5)
}
 0x231   : > { %s4659_s26 = scalar_lea.hbm %s5501_s19, 2048  ;;  %s4663_s20 = scalar_lea.hbm %s5557_s3, 8192 }
 0x232   : > { %p4660_p9 = scmp.ne.s32.totalorder %s5501_s19, %s4659_s26  ;;  %p4664_p3 = scmp.lt.u32.totalorder %s5501_s19, %s5557_s3 }
 0x233   : > { %p4665_p7 = scmp.lt.u32.totalorder %s4663_s20, %s4659_s26  ;;  %p4667_p4 = scmp.lt.u32.totalorder %s4659_s26, %s5501_s19 }
 0x234   : > { %p4661_p1 = pnand %p4660_p9, %p4854_p11 }
 0x235   : > { %p4666_p10 = por %p4665_p7, %p4664_p3 }
 0x236   : > { %p4662_p2 = pneg %p4661_p1 }
 0x237   : > { %p4668_p6 = por %p4667_p4, %p4666_p10 }
 0x239   : > { %p4669_p8 = pnand %p4668_p6, %p4662_p2 }
 0x23b   : > { %4672 = shalt.err (!%p4669_p8)
}
 0x23c   : > { %s4738_s10 = smov 128   ;;  %s4739_s11 = smov 8  }
 0x23d   : > { %4516 = dma.vmem_to_hbm [thread:$0]  (%p4854_p11), %s5503_s7, 2048, %s5501_s19, %s3022_s15, %s4738_s10, %s4738_s10, %s4739_s11  }
 0x23e PF: > { %p4533_p12 = scmp.ge.s32.totalorder %s4731_s17, 2  ;;  %s3051_s8 = sand.u32 1, %s4711_s12  }
 0x23f   : > { %p5628_p13 = scmp.ne.s32.totalorder %s5583_s23, 0  ;;  %s3052_s18 = scalar_lea.sflag [#allocation5], %s3051_s8 }
 0x241   : > { %p4527_p0 = pnand %p4533_p12, %p5628_p13 }
 0x243   : > { %4706 = dma.done.wait (!%p4527_p0), %s3052_s18, 2048  }
 0x244   : > { %4708 = vsyncadd (!%p4527_p0), %s3052_s18, 4294965248  ;;  %s20_s17 = sadd.s32 1, %s4731_s17   ;;  %s5629_s12 = smov %s4715_s13 }
 0x245   : > { %p17_p5 = scmp.ge.s32.totalorder %s20_s17, 6   ;;  %s5630_s13 = smov %s4719_s14 }
 0x246   : > { %s5631_s14 = smov %s4863_s5  ;;  %s5632_s15 = smov %s4727_s16 }
 0x247   : > { %s5633_s16 = smov %s5635_s28  ;;  %19 = sbr.rel (!%p17_p5) target bundleno = 7 (0x7), region = 101 }
 0x24e   :  { %3057 = vsyncpa [#allocation4], 1 }
 0x24f   :  { %3059 = vsyncpa [#allocation4 + $0x1], 1 }
 0x250   :  { %3060 = vsyncpa [#allocation7], 1 }
 0x251   :  { %3061 = vsyncpa [#allocation5], 1 }
 0x252   :  { %3063 = vsyncpa [#allocation5 + $0x1], 1 }

</bundles_post_ra>
